<compile_context>
chip_gen: v6e
topology: v6e:2x2x1
jax: 0.10.0
libtpu: 0.0.40
codegen_flags: <defaults>
</compile_context>

<pallas_src>
import functools

import jax
import jax.numpy as jnp
from jax import lax
from jax.experimental import pallas as pl
from jax.experimental.pallas import tpu as pltpu


def _bottleneck_kernel(x_ref, w1_ref, w2_ref, w3_ref, b1_ref, b2_ref, b3_ref,
                       o_ref, pad_ref, *, H, W, P):
    HW = H * W
    C = w1_ref.shape[1]

    # --- conv1 (1x1) + bn1 bias + relu ---------------------------------------
    h1 = jnp.dot(x_ref[0].astype(jnp.bfloat16), w1_ref[...],
                 preferred_element_type=jnp.float32)
    h1 = jnp.maximum(h1 + b1_ref[...], 0.0)                      # (HW, C) f32

    # --- conv2 (3x3, pad=1, stride=1) + bn2 bias + relu ----------------------
    # +/-1 column shifts via XLU roll; wrap-around rows land on masked edge cols.
    col = lax.broadcasted_iota(jnp.int32, (HW, 1), 0) % W
    left = jnp.where(col > 0, pltpu.roll(h1, shift=1, axis=0), 0.0)            # h1[i-1]
    right = jnp.where(col < W - 1, pltpu.roll(h1, shift=HW - 1, axis=0), 0.0)  # h1[i+1]

    # Zero only the 2*P border rows.  The interior [P, P+HW) is fully overwritten
    # below; the border is re-zeroed every step (scratch may be per-core under a
    # "parallel" grid, so a program_id==0 guard would be unsafe) -- still ~HW/2P
    # times less store traffic than zeroing the whole buffer.
    zeros_border = jnp.zeros((P, 3 * C), jnp.bfloat16)
    pad_ref[0:P, :] = zeros_border
    pad_ref[P + HW:P + HW + P, :] = zeros_border
    # Structural lane-concat [dx=-1 | dx=0 | dx=+1] via column-offset stores.
    pad_ref[P:P + HW, 0:C] = left.astype(jnp.bfloat16)
    pad_ref[P:P + HW, C:2 * C] = h1.astype(jnp.bfloat16)
    pad_ref[P:P + HW, 2 * C:3 * C] = right.astype(jnp.bfloat16)

    acc = jnp.zeros((HW, C), jnp.float32)
    for d, dy in enumerate((-1, 0, 1)):
        start = P + dy * W                                       # static, aligned
        win = pad_ref[start:start + HW, :]                       # (HW, 3C) bf16
        acc = acc + jnp.dot(win, w2_ref[d], preferred_element_type=jnp.float32)
    h2 = jnp.maximum(acc + b2_ref[...], 0.0)                     # (HW, C) f32

    # --- conv3 (1x1) + bn3 bias + residual + relu ----------------------------
    out = jnp.dot(h2.astype(jnp.bfloat16), w3_ref[...],
                  preferred_element_type=jnp.float32)
    out = out + b3_ref[...]
    out = jnp.maximum(out + x_ref[0], 0.0)     # residual re-read from the VMEM block
    o_ref[0] = out.astype(o_ref.dtype)


def _fold_bn_into_weights(params):
    """Fold eval-mode BN scales into conv weight columns; cast weights to bf16."""
    (w1, w2, w3, s1, b1, s2, b2, s3, b3) = params
    w1f = (w1 * s1[0][None, :]).astype(jnp.bfloat16)             # (Cin, C)
    w2f = (w2 * s2[0][None, None, :]).astype(jnp.bfloat16)       # (9, C, C)
    w3f = (w3 * s3[0][None, :]).astype(jnp.bfloat16)             # (C, 4C)
    return w1f, w2f, w3f, b1, b2, b3


def bottleneck_pallas(x_nchw, params, *, H, W):
    """x_nchw: (N, Cin, H, W) float32.  Returns (N, 4*C, H, W) float32."""
    w1f, w2f, w3f, b1, b2, b3 = _fold_bn_into_weights(params)
    N, Cin = x_nchw.shape[0], x_nchw.shape[1]
    C = w1f.shape[1]
    C4 = w3f.shape[1]
    HW = H * W
    assert Cin == C4, (
        f"identity residual (downsample=None) requires in_channels == 4*out_channels,"
        f" got Cin={Cin}, 4*C={C4}")

    # Flat-buffer border: must cover the +/-W row shift (P >= W); multiple of 16
    # keeps bf16 sublane tiles aligned for the window loads / stores.
    P = -(-W // 16) * 16

    # 3x3 taps regrouped per dy row: (3, 3C, C), K-order [dx=-1 | dx=0 | dx=+1].
    w2rows = jnp.stack(
        [jnp.concatenate([w2f[3 * d + 0], w2f[3 * d + 1], w2f[3 * d + 2]], axis=0)
         for d in range(3)], axis=0)

    # glue: NCHW -> NHWC -> (N, HW, Cin)
    x_flat = jnp.transpose(x_nchw, (0, 2, 3, 1)).reshape(N, HW, Cin)

    kernel = functools.partial(_bottleneck_kernel, H=H, W=W, P=P)

    # VMEM budget: double-buffered x/out blocks + weights/biases + scratch, with
    # headroom (v7x default scoped limit is 32 MiB of 64 MiB physical).
    vmem_need = (2 * (HW * Cin * 4 + HW * C4 * 4)
                 + 2 * ((Cin * C + 9 * C * C + C * C4) * 2 + (2 * C + C4) * 4)
                 + (HW + 2 * P) * 3 * C * 2)
    vmem_limit = min(64 * 1024 * 1024,
                     max(2 * vmem_need + (2 << 20), 16 * 1024 * 1024))

    out_flat = pl.pallas_call(
        kernel,
        out_shape=jax.ShapeDtypeStruct((N, HW, C4), jnp.float32),
        grid_spec=pltpu.PrefetchScalarGridSpec(
            num_scalar_prefetch=0,
            grid=(N,),
            in_specs=[
                pl.BlockSpec((1, HW, Cin), lambda n: (n, 0, 0)),   # x
                pl.BlockSpec((Cin, C), lambda n: (0, 0)),          # w1 (bn1 folded)
                pl.BlockSpec((3, 3 * C, C), lambda n: (0, 0, 0)),  # w2 rows (bn2 folded)
                pl.BlockSpec((C, C4), lambda n: (0, 0)),           # w3 (bn3 folded)
                pl.BlockSpec((1, C), lambda n: (0, 0)),            # b1
                pl.BlockSpec((1, C), lambda n: (0, 0)),            # b2
                pl.BlockSpec((1, C4), lambda n: (0, 0)),           # b3
            ],
            out_specs=pl.BlockSpec((1, HW, C4), lambda n: (n, 0, 0)),
            scratch_shapes=[pltpu.VMEM((HW + 2 * P, 3 * C), jnp.bfloat16)],
        ),
        compiler_params=pltpu.CompilerParams(
            dimension_semantics=("parallel",),
            vmem_limit_bytes=vmem_limit),
    )(x_flat, w1f, w2rows, w3f, b1, b2, b3)

    # glue: (N, HW, 4C) -> NCHW
    return jnp.transpose(out_flat.reshape(N, H, W, C4), (0, 3, 1, 2))


def _reference(x_nchw, params, *, H, W):
    """Plain-JAX reference with matching precision (bf16-rounded matmul operands,
    f32 products/accumulation), NHWC layout."""
    w1f, w2f, w3f, b1, b2, b3 = _fold_bn_into_weights(params)
    bf = lambda a: a.astype(jnp.bfloat16).astype(jnp.float32)
    w1r, w2r, w3r = bf(w1f), bf(w2f), bf(w3f)
    x = jnp.transpose(x_nchw, (0, 2, 3, 1))                      # (N,H,W,Cin)
    h1 = jnp.maximum(jnp.einsum('nhwc,cd->nhwd', bf(x), w1r) + b1[0], 0.0)
    h1p = jnp.pad(bf(h1), ((0, 0), (1, 1), (1, 1), (0, 0)))
    acc = jnp.zeros(h1.shape, jnp.float32)
    for ky in range(3):
        for kx in range(3):
            acc = acc + jnp.einsum('nhwc,cd->nhwd',
                                   h1p[:, ky:ky + H, kx:kx + W, :], w2r[ky * 3 + kx])
    h2 = jnp.maximum(acc + b2[0], 0.0)
    out = jnp.einsum('nhwc,cd->nhwd', bf(h2), w3r) + b3[0]
    out = jnp.maximum(out + x, 0.0)
    return jnp.transpose(out, (0, 3, 1, 2))


def make_params(key, Cin, C):
    """Deterministic synthetic weights; BN (eval mode) folded to scale/bias."""
    C4 = 4 * C
    ks = jax.random.split(key, 12)
    eps = 1e-5
    # conv weights stored as (Cin, Cout) matmul matrices (per 3x3 tap for conv2)
    w1 = jax.random.normal(ks[0], (Cin, C), jnp.float32) * 0.2
    w2 = jax.random.normal(ks[1], (9, C, C), jnp.float32) * 0.2
    w3 = jax.random.normal(ks[2], (C, C4), jnp.float32) * 0.2

    def bn_fold(kg, kb, km, kv, ch):
        gamma = 1.0 + 0.1 * jax.random.normal(kg, (ch,), jnp.float32)
        beta = 0.1 * jax.random.normal(kb, (ch,), jnp.float32)
        mean = 0.1 * jax.random.normal(km, (ch,), jnp.float32)
        var = 1.0 + 0.1 * jax.random.uniform(kv, (ch,), jnp.float32)
        scale = gamma / jnp.sqrt(var + eps)
        bias = beta - mean * scale
        return scale.reshape(1, ch), bias.reshape(1, ch)

    s1, b1 = bn_fold(ks[3], ks[4], ks[5], ks[6], C)
    s2, b2 = bn_fold(ks[7], ks[8], ks[9], ks[10], C)
    s3, b3 = bn_fold(ks[11], ks[0], ks[1], ks[2], C4)
    return (w1, w2, w3, s1, b1, s2, b2, s3, b3)


if __name__ == "__main__":
    # Small shapes: the identity residual path requires Cin == 4 * C.
    N, Cin, H, W = 2, 16, 16, 16
    C = Cin // 4  # bottleneck width = 4

    key = jax.random.PRNGKey(0)
    kx, kp = jax.random.split(key)
    x = jax.random.normal(kx, (N, Cin, H, W), jnp.float32)   # NCHW, like PyTorch
    params = make_params(kp, Cin, C)

    out = bottleneck_pallas(x, params, H=H, W=W)
    out = jax.block_until_ready(out)

    ref = _reference(x, params, H=H, W=W)
    assert out.shape == (N, 4 * C, H, W), out.shape
    err = float(jnp.max(jnp.abs(out - ref)))
    assert err < 1e-2, err

    print("KERNEL_OK")
</pallas_src>

<mosaic_0001>
module attributes {stable_mosaic.version = 11 : i64} {
  func.func @_bottleneck_kernel(%arg0: i32, %arg1: memref<1x256x16xf32, #tpu.memory_space<vmem>>, %arg2: memref<16x4xbf16, #tpu.memory_space<vmem>>, %arg3: memref<3x12x4xbf16, #tpu.memory_space<vmem>>, %arg4: memref<4x16xbf16, #tpu.memory_space<vmem>>, %arg5: memref<1x4xf32, #tpu.memory_space<vmem>>, %arg6: memref<1x4xf32, #tpu.memory_space<vmem>>, %arg7: memref<1x16xf32, #tpu.memory_space<vmem>>, %arg8: memref<1x256x16xf32, #tpu.memory_space<vmem>>, %arg9: memref<288x12xbf16, #tpu.memory_space<vmem>>) attributes {dimension_semantics = [#tpu.dimension_semantics<parallel>], iteration_bounds = array<i64: 2>, scalar_prefetch = 0 : i64, scratch_operands = 1 : i64, tpu.core_type = #tpu.core_type<tc>, window_params = [{transform_indices = @transform_0, window_bounds = array<i64: 1, 256, 16>}, {pipeline_mode = #tpu.pipeline_mode<synchronous>, transform_indices = @transform_1, window_bounds = array<i64: 16, 4>}, {pipeline_mode = #tpu.pipeline_mode<synchronous>, transform_indices = @transform_2, window_bounds = array<i64: 3, 12, 4>}, {pipeline_mode = #tpu.pipeline_mode<synchronous>, transform_indices = @transform_3, window_bounds = array<i64: 4, 16>}, {pipeline_mode = #tpu.pipeline_mode<synchronous>, transform_indices = @transform_4, window_bounds = array<i64: 1, 4>}, {pipeline_mode = #tpu.pipeline_mode<synchronous>, transform_indices = @transform_5, window_bounds = array<i64: 1, 4>}, {pipeline_mode = #tpu.pipeline_mode<synchronous>, transform_indices = @transform_6, window_bounds = array<i64: 1, 16>}, {transform_indices = @transform_7, window_bounds = array<i64: 1, 256, 16>}]} {
    %c0 = arith.constant 0 : index
    %c0_0 = arith.constant 0 : index
    %c0_1 = arith.constant 0 : index
    %0 = vector.load %arg1[%c0, %c0_0, %c0_1] : memref<1x256x16xf32, #tpu.memory_space<vmem>>, vector<1x256x16xf32>
    %1 = vector.shape_cast %0 : vector<1x256x16xf32> to vector<256x16xf32>
    %2 = arith.truncf %1 : vector<256x16xf32> to vector<256x16xbf16>
    %c0_2 = arith.constant 0 : index
    %c0_3 = arith.constant 0 : index
    %3 = vector.load %arg2[%c0_2, %c0_3] : memref<16x4xbf16, #tpu.memory_space<vmem>>, vector<16x4xbf16>
    %cst = arith.constant dense<0.000000e+00> : vector<256x4xf32>
    %4 = tpu.matmul %2, %3, %cst {dimension_numbers = #tpu.dot_dimension_numbers<[1], [0], [0], [1], [0, 0, 1, 1], [], []>} : vector<256x16xbf16>, vector<16x4xbf16>, vector<256x4xf32> -> vector<256x4xf32>
    %c0_4 = arith.constant 0 : index
    %c0_5 = arith.constant 0 : index
    %5 = vector.load %arg5[%c0_4, %c0_5] : memref<1x4xf32, #tpu.memory_space<vmem>>, vector<1x4xf32>
    %6 = vector.broadcast %5 : vector<1x4xf32> to vector<256x4xf32>
    %7 = arith.addf %4, %6 : vector<256x4xf32>
    %cst_6 = arith.constant 0.000000e+00 : f32
    %8 = vector.broadcast %cst_6 : f32 to vector<256x4xf32>
    %9 = arith.maximumf %7, %8 : vector<256x4xf32>
    %10 = tpu.iota {dimensions = array<i32: 0>} : vector<256x1xi32>
    %c16_i32 = arith.constant 16 : i32
    %c0_i32 = arith.constant 0 : i32
    %11 = arith.cmpi eq, %c16_i32, %c0_i32 : i32
    %c1_i32 = arith.constant 1 : i32
    %12 = arith.select %11, %c1_i32, %c16_i32 : i32
    %13 = vector.broadcast %12 : i32 to vector<256x1xi32>
    %14 = arith.remsi %10, %13 : vector<256x1xi32>
    %c0_i32_7 = arith.constant 0 : i32
    %15 = vector.broadcast %c0_i32_7 : i32 to vector<256x1xi32>
    %16 = arith.cmpi ne, %14, %15 : vector<256x1xi32>
    %c0_i32_8 = arith.constant 0 : i32
    %17 = vector.broadcast %c0_i32_8 : i32 to vector<256x1xi32>
    %18 = arith.cmpi slt, %14, %17 : vector<256x1xi32>
    %c0_i32_9 = arith.constant 0 : i32
    %19 = arith.cmpi slt, %12, %c0_i32_9 : i32
    %20 = vector.broadcast %19 : i1 to vector<256x1xi1>
    %21 = vector.broadcast %20 : vector<256x1xi1> to vector<256x1xi1>
    %22 = arith.xori %18, %21 : vector<256x1xi1>
    %23 = arith.andi %22, %16 : vector<256x1xi1>
    %24 = vector.broadcast %12 : i32 to vector<256x1xi32>
    %25 = arith.addi %14, %24 : vector<256x1xi32>
    %26 = arith.select %23, %25, %14 : vector<256x1xi1>, vector<256x1xi32>
    %c0_i32_10 = arith.constant 0 : i32
    %27 = vector.broadcast %c0_i32_10 : i32 to vector<256x1xi32>
    %28 = arith.cmpi sgt, %26, %27 : vector<256x1xi32>
    %c1_i32_11 = arith.constant 1 : i32
    %29 = tpu.dynamic_rotate %9 by %c1_i32_11 dim 0 : vector<256x4xf32>, i32 -> vector<256x4xf32>
    %cst_12 = arith.constant 0.000000e+00 : f32
    %30 = vector.shape_cast %28 : vector<256x1xi1> to vector<256x1xi1>
    %31 = vector.broadcast %30 : vector<256x1xi1> to vector<256x4xi1>
    %32 = vector.broadcast %cst_12 : f32 to vector<256x4xf32>
    %33 = arith.select %31, %29, %32 : vector<256x4xi1>, vector<256x4xf32>
    %c15_i32 = arith.constant 15 : i32
    %34 = vector.broadcast %c15_i32 : i32 to vector<256x1xi32>
    %35 = arith.cmpi slt, %26, %34 : vector<256x1xi32>
    %c255_i32 = arith.constant 255 : i32
    %36 = tpu.dynamic_rotate %9 by %c255_i32 dim 0 : vector<256x4xf32>, i32 -> vector<256x4xf32>
    %cst_13 = arith.constant 0.000000e+00 : f32
    %37 = vector.shape_cast %35 : vector<256x1xi1> to vector<256x1xi1>
    %38 = vector.broadcast %37 : vector<256x1xi1> to vector<256x4xi1>
    %39 = vector.broadcast %cst_13 : f32 to vector<256x4xf32>
    %40 = arith.select %38, %36, %39 : vector<256x4xi1>, vector<256x4xf32>
    %cst_14 = arith.constant 0.000000e+00 : bf16
    %41 = vector.broadcast %cst_14 : bf16 to vector<16x12xbf16>
    %c0_15 = arith.constant 0 : index
    %c0_16 = arith.constant 0 : index
    %42 = vector.load %arg9[%c0_15, %c0_16] : memref<288x12xbf16, #tpu.memory_space<vmem>>, vector<16x12xbf16>
    tpu.vector_store %arg9[%c0_15, %c0_16], %41 {strides = array<i32>} : memref<288x12xbf16, #tpu.memory_space<vmem>>, vector<16x12xbf16>,
    %c272 = arith.constant 272 : index
    %c0_17 = arith.constant 0 : index
    %43 = vector.load %arg9[%c272, %c0_17] : memref<288x12xbf16, #tpu.memory_space<vmem>>, vector<16x12xbf16>
    tpu.vector_store %arg9[%c272, %c0_17], %41 {strides = array<i32>} : memref<288x12xbf16, #tpu.memory_space<vmem>>, vector<16x12xbf16>,
    %44 = arith.truncf %33 : vector<256x4xf32> to vector<256x4xbf16>
    %c16 = arith.constant 16 : index
    %c0_18 = arith.constant 0 : index
    %45 = vector.load %arg9[%c16, %c0_18] : memref<288x12xbf16, #tpu.memory_space<vmem>>, vector<256x4xbf16>
    tpu.vector_store %arg9[%c16, %c0_18], %44 {strides = array<i32>} : memref<288x12xbf16, #tpu.memory_space<vmem>>, vector<256x4xbf16>,
    %46 = arith.truncf %9 : vector<256x4xf32> to vector<256x4xbf16>
    %c16_19 = arith.constant 16 : index
    %c4 = arith.constant 4 : index
    %47 = vector.load %arg9[%c16_19, %c4] : memref<288x12xbf16, #tpu.memory_space<vmem>>, vector<256x4xbf16>
    tpu.vector_store %arg9[%c16_19, %c4], %46 {strides = array<i32>} : memref<288x12xbf16, #tpu.memory_space<vmem>>, vector<256x4xbf16>,
    %48 = arith.truncf %40 : vector<256x4xf32> to vector<256x4xbf16>
    %c16_20 = arith.constant 16 : index
    %c8 = arith.constant 8 : index
    %49 = vector.load %arg9[%c16_20, %c8] : memref<288x12xbf16, #tpu.memory_space<vmem>>, vector<256x4xbf16>
    tpu.vector_store %arg9[%c16_20, %c8], %48 {strides = array<i32>} : memref<288x12xbf16, #tpu.memory_space<vmem>>, vector<256x4xbf16>,
    %cst_21 = arith.constant 0.000000e+00 : f32
    %50 = vector.broadcast %cst_21 : f32 to vector<256x4xf32>
    %c0_22 = arith.constant 0 : index
    %c0_23 = arith.constant 0 : index
    %51 = vector.load %arg9[%c0_22, %c0_23] : memref<288x12xbf16, #tpu.memory_space<vmem>>, vector<256x12xbf16>
    %c0_24 = arith.constant 0 : index
    %c0_25 = arith.constant 0 : index
    %c0_26 = arith.constant 0 : index
    %52 = vector.load %arg3[%c0_24, %c0_25, %c0_26] : memref<3x12x4xbf16, #tpu.memory_space<vmem>>, vector<1x12x4xbf16>
    %53 = vector.shape_cast %52 : vector<1x12x4xbf16> to vector<12x4xbf16>
    %cst_27 = arith.constant dense<0.000000e+00> : vector<256x4xf32>
    %54 = tpu.matmul %51, %53, %cst_27 {dimension_numbers = #tpu.dot_dimension_numbers<[1], [0], [0], [1], [0, 0, 1, 1], [], []>} : vector<256x12xbf16>, vector<12x4xbf16>, vector<256x4xf32> -> vector<256x4xf32>
    %55 = arith.addf %50, %54 : vector<256x4xf32>
    %c16_28 = arith.constant 16 : index
    %c0_29 = arith.constant 0 : index
    %56 = vector.load %arg9[%c16_28, %c0_29] : memref<288x12xbf16, #tpu.memory_space<vmem>>, vector<256x12xbf16>
    %c1 = arith.constant 1 : index
    %c0_30 = arith.constant 0 : index
    %c0_31 = arith.constant 0 : index
    %57 = vector.load %arg3[%c1, %c0_30, %c0_31] : memref<3x12x4xbf16, #tpu.memory_space<vmem>>, vector<1x12x4xbf16>
    %58 = vector.shape_cast %57 : vector<1x12x4xbf16> to vector<12x4xbf16>
    %cst_32 = arith.constant dense<0.000000e+00> : vector<256x4xf32>
    %59 = tpu.matmul %56, %58, %cst_32 {dimension_numbers = #tpu.dot_dimension_numbers<[1], [0], [0], [1], [0, 0, 1, 1], [], []>} : vector<256x12xbf16>, vector<12x4xbf16>, vector<256x4xf32> -> vector<256x4xf32>
    %60 = arith.addf %55, %59 : vector<256x4xf32>
    %c32 = arith.constant 32 : index
    %c0_33 = arith.constant 0 : index
    %61 = vector.load %arg9[%c32, %c0_33] : memref<288x12xbf16, #tpu.memory_space<vmem>>, vector<256x12xbf16>
    %c2 = arith.constant 2 : index
    %c0_34 = arith.constant 0 : index
    %c0_35 = arith.constant 0 : index
    %62 = vector.load %arg3[%c2, %c0_34, %c0_35] : memref<3x12x4xbf16, #tpu.memory_space<vmem>>, vector<1x12x4xbf16>
    %63 = vector.shape_cast %62 : vector<1x12x4xbf16> to vector<12x4xbf16>
    %cst_36 = arith.constant dense<0.000000e+00> : vector<256x4xf32>
    %64 = tpu.matmul %61, %63, %cst_36 {dimension_numbers = #tpu.dot_dimension_numbers<[1], [0], [0], [1], [0, 0, 1, 1], [], []>} : vector<256x12xbf16>, vector<12x4xbf16>, vector<256x4xf32> -> vector<256x4xf32>
    %65 = arith.addf %60, %64 : vector<256x4xf32>
    %c0_37 = arith.constant 0 : index
    %c0_38 = arith.constant 0 : index
    %66 = vector.load %arg6[%c0_37, %c0_38] : memref<1x4xf32, #tpu.memory_space<vmem>>, vector<1x4xf32>
    %67 = vector.broadcast %66 : vector<1x4xf32> to vector<256x4xf32>
    %68 = arith.addf %65, %67 : vector<256x4xf32>
    %cst_39 = arith.constant 0.000000e+00 : f32
    %69 = vector.broadcast %cst_39 : f32 to vector<256x4xf32>
    %70 = arith.maximumf %68, %69 : vector<256x4xf32>
    %71 = arith.truncf %70 : vector<256x4xf32> to vector<256x4xbf16>
    %c0_40 = arith.constant 0 : index
    %c0_41 = arith.constant 0 : index
    %72 = vector.load %arg4[%c0_40, %c0_41] : memref<4x16xbf16, #tpu.memory_space<vmem>>, vector<4x16xbf16>
    %cst_42 = arith.constant dense<0.000000e+00> : vector<256x16xf32>
    %73 = tpu.matmul %71, %72, %cst_42 {dimension_numbers = #tpu.dot_dimension_numbers<[1], [0], [0], [1], [0, 0, 1, 1], [], []>} : vector<256x4xbf16>, vector<4x16xbf16>, vector<256x16xf32> -> vector<256x16xf32>
    %c0_43 = arith.constant 0 : index
    %c0_44 = arith.constant 0 : index
    %74 = vector.load %arg7[%c0_43, %c0_44] : memref<1x16xf32, #tpu.memory_space<vmem>>, vector<1x16xf32>
    %75 = vector.broadcast %74 : vector<1x16xf32> to vector<256x16xf32>
    %76 = arith.addf %73, %75 : vector<256x16xf32>
    %c0_45 = arith.constant 0 : index
    %c0_46 = arith.constant 0 : index
    %c0_47 = arith.constant 0 : index
    %77 = vector.load %arg1[%c0_45, %c0_46, %c0_47] : memref<1x256x16xf32, #tpu.memory_space<vmem>>, vector<1x256x16xf32>
    %78 = vector.shape_cast %77 : vector<1x256x16xf32> to vector<256x16xf32>
    %79 = arith.addf %76, %78 : vector<256x16xf32>
    %cst_48 = arith.constant 0.000000e+00 : f32
    %80 = vector.broadcast %cst_48 : f32 to vector<256x16xf32>
    %81 = arith.maximumf %79, %80 : vector<256x16xf32>
    %c0_49 = arith.constant 0 : index
    %c0_50 = arith.constant 0 : index
    %c0_51 = arith.constant 0 : index
    %82 = vector.load %arg8[%c0_49, %c0_50, %c0_51] : memref<1x256x16xf32, #tpu.memory_space<vmem>>, vector<1x256x16xf32>
    %83 = vector.shape_cast %82 : vector<1x256x16xf32> to vector<256x16xf32>
    %84 = vector.shape_cast %81 : vector<256x16xf32> to vector<1x256x16xf32>
    tpu.vector_store %arg8[%c0_49, %c0_50, %c0_51], %84 {strides = array<i32>} : memref<1x256x16xf32, #tpu.memory_space<vmem>>, vector<1x256x16xf32>,
    return
  }
  func.func @transform_0(%arg0: i32) -> (i32, i32, i32) {
    %c0_i32 = arith.constant 0 : i32
    %c0_i32_0 = arith.constant 0 : i32
    %c0_i32_1 = arith.constant 0 : i32
    return %arg0, %c0_i32, %c0_i32_0 : i32, i32, i32
  }
  func.func @transform_1(%arg0: i32) -> (i32, i32) {
    %c0_i32 = arith.constant 0 : i32
    %c0_i32_0 = arith.constant 0 : i32
    %c0_i32_1 = arith.constant 0 : i32
    return %c0_i32, %c0_i32_0 : i32, i32
  }
  func.func @transform_2(%arg0: i32) -> (i32, i32, i32) {
    %c0_i32 = arith.constant 0 : i32
    %c0_i32_0 = arith.constant 0 : i32
    %c0_i32_1 = arith.constant 0 : i32
    %c0_i32_2 = arith.constant 0 : i32
    return %c0_i32, %c0_i32_0, %c0_i32_1 : i32, i32, i32
  }
  func.func @transform_3(%arg0: i32) -> (i32, i32) {
    %c0_i32 = arith.constant 0 : i32
    %c0_i32_0 = arith.constant 0 : i32
    %c0_i32_1 = arith.constant 0 : i32
    return %c0_i32, %c0_i32_0 : i32, i32
  }
  func.func @transform_4(%arg0: i32) -> (i32, i32) {
    %c0_i32 = arith.constant 0 : i32
    %c0_i32_0 = arith.constant 0 : i32
    %c0_i32_1 = arith.constant 0 : i32
    return %c0_i32, %c0_i32_0 : i32, i32
  }
  func.func @transform_5(%arg0: i32) -> (i32, i32) {
    %c0_i32 = arith.constant 0 : i32
    %c0_i32_0 = arith.constant 0 : i32
    %c0_i32_1 = arith.constant 0 : i32
    return %c0_i32, %c0_i32_0 : i32, i32
  }
  func.func @transform_6(%arg0: i32) -> (i32, i32) {
    %c0_i32 = arith.constant 0 : i32
    %c0_i32_0 = arith.constant 0 : i32
    %c0_i32_1 = arith.constant 0 : i32
    return %c0_i32, %c0_i32_0 : i32, i32
  }
  func.func @transform_7(%arg0: i32) -> (i32, i32, i32) {
    %c0_i32 = arith.constant 0 : i32
    %c0_i32_0 = arith.constant 0 : i32
    %c0_i32_1 = arith.constant 0 : i32
    return %arg0, %c0_i32, %c0_i32_0 : i32, i32, i32
  }
}

</mosaic_0001>

<bundles_post_ra>
// kernel: tpu_custom_call.1
= control target key start
LH: loop header
LB: loop body
LE: loop exit
PB: predicated region body
PF: predicated region fallthrough
CT: control target
= control target key end

     0   :  { %s4064_s24 = smov 0   ;;  %s5639_s0 = inlined_call_operand.vmem [shape: f32[2,256,16], index: 0, kind: input, shape index: {}]   ;;  %s5640_s1 = inlined_call_operand.vmem [shape: bf16[16,4], index: 1, kind: input, shape index: {}]   ;;  %s5641_s2 = inlined_call_operand.vmem [shape: bf16[3,12,4], index: 2, kind: input, shape index: {}]   ;;  %s5642_s3 = inlined_call_operand.vmem [shape: bf16[4,16], index: 3, kind: input, shape index: {}]   ;;  %s5643_s4 = inlined_call_operand.vmem [shape: f32[1,4], index: 4, kind: input, shape index: {}]   ;;  %s5644_s5 = inlined_call_operand.vmem [shape: f32[1,4], index: 5, kind: input, shape index: {}]   ;;  %s5645_s6 = inlined_call_operand.vmem [shape: f32[1,16], index: 6, kind: input, shape index: {}]   ;;  %s5646_s7 = inlined_call_operand.vmem [shape: f32[2,256,16], index: 7, kind: output, shape index: {}]  }
   0x1 LB: > { %s3375_s25 = sadd.s32 4294967295, %s4019_s24   ;;  %p3379_p0 = scmp.ge.s32.totalorder %s4019_s24, 1  ;;  %s4019_s24 = sphi %s4064_s24, %s17_s24  }
   0x2   : > { %p237_p1 = scmp.lt.s32.totalorder %s4019_s24, 3 }
   0x4   : > { %p238_p2 = pnand %p3379_p0, %p237_p1 }
   0x6   : > { %241 = sbr.rel (%p238_p2) target bundleno = 969 (0x3c9), region = 48 }
   0xb   : > { %v3976_v0 = vld [vmem:[%s5640_s1] sm:$0xff]   ;;  %p269_p3 = scmp.lt.s32.totalorder %s3375_s25, 1  ;;  %vm343_vm0 = vcmask 130048   ;;  %v585_v49 = vlaneseq  ;;  %s4021_s11 = smov 4   ;;  %vm1521_vm14 = vcmask 27648  }
   0xc   : > { %3789 = vmatprep.subr.bf16.mxu0 %v3976_v0  ;;  %3959 = vmatprep.subr.bf16.mxu1 %v3976_v0  ;;  %v4138_v51 = vld [vmem:[%s5643_s4] ss:$0 sm:$0xff]  ;;  %s4022_s12 = smov 8  }
   0xd   : > { %s5867_s25 = smov (!%p269_p3, %s3375_s25), 1  ;;  %3790 = vmatpush3.bf16.msra.mxu0 %v3976_v0  ;;  %3960 = vmatpush3.bf16.msra.mxu1 %v3976_v0  ;;  %v4133_v50 = vshrl.u32 %v585_v49, 7 }
   0xe   : > { %s3606_s28 = sshll.u32 %s5867_s25, 8 }
   0xf   : > { %s4083_s8 = scalar_lea.vmem %s5639_s0, %s3606_s28  ;;  %v4143_v57 = vadd.s32 8, %v4133_v50  ;;  %v4146_v59 = vadd.s32 136, %v4133_v50  ;;  %v4149_v61 = vadd.s32 24, %v4133_v50  ;;  %v4152_v62 = vadd.s32 152, %v4133_v50  ;;  %s5510_s30 = scalar_lea.vmem %s5646_s7, %s3606_s28 }
  0x10   : > { %v280_v1 = vld [vmem:[%s4083_s8] sm:$0xff]  ;;  %v281_v2 = vld [vmem:[%s4083_s8 + $0x8] sm:$0xff]  ;;  %v282_v6 = vld [vmem:[%s4083_s8 + $0x10] sm:$0xff]  ;;  %v4155_v63 = vadd.s32 40, %v4133_v50  ;;  %v4158_v0 = vadd.s32 144, %v4133_v50  ;;  %vm1259_vm1 = vcmp.lt.s32.totalorder %v4133_v50, 7 }
  0x11   : > { %v296_v3 = vld [vmem:[%s4083_s8 + $0x80] sm:$0xff]  ;;  %v312_v4 = vpack.c.bf16 %v281_v2, %v280_v1  ;;  %v297_v5 = vld [vmem:[%s4083_s8 + $0x88] sm:$0xff]  ;;  %v283_v7 = vld [vmem:[%s4083_s8 + $0x18] sm:$0xff]  ;;  %v4244_v49 = vadd.s32 128, %v4133_v50  ;;  %vm1066_vm11 = vcmp.lt.s32.totalorder %v4133_v50, 1 }
  0x12   : > { %v320_v8 = vpack.c.bf16 %v297_v5, %v296_v3  ;;  %v313_v9 = vpack.c.bf16 %v283_v7, %v282_v6  ;;  %v298_v10 = vld [vmem:[%s4083_s8 + $0x90] sm:$0xff]  ;;  %v299_v11 = vld [vmem:[%s4083_s8 + $0x98] sm:$0xff]  ;;  %v284_v12 = vld [vmem:[%s4083_s8 + $0x20] sm:$0xff]  ;;  %v4165_v5 = vadd.s32 56, %v4133_v50 }
  0x13   : > { %3791 = vmatprep.mubr.msk.bf16.mxu0 %vm343_vm0, %v312_v4  ;;  %v321_v13 = vpack.c.bf16 %v299_v11, %v298_v10  ;;  %v285_v14 = vld [vmem:[%s4083_s8 + $0x28] sm:$0xff]  ;;  %v300_v15 = vld [vmem:[%s4083_s8 + $0xa0] sm:$0xff]  ;;  %v286_v19 = vld [vmem:[%s4083_s8 + $0x30] sm:$0xff]  ;;  %v741_v11 = vand.u32 15, %v4146_v59 }
  0x14   : > { %v301_v16 = vld [vmem:[%s4083_s8 + $0xa8] sm:$0xff]  ;;  %3807 = vmatprep.mubr.msk.bf16.mxu1 %vm343_vm0, %v320_v8  ;;  %3792 = vmatmul.mubr.msk.bf16.vlgmr.msra.gmra.mxu0 %vm343_vm0, %v313_v9  ;;  %v314_v17 = vpack.c.bf16 %v285_v14, %v284_v12  ;;  %v287_v20 = vld [vmem:[%s4083_s8 + $0x38] sm:$0xff]  ;;  %v302_v21 = vld [vmem:[%s4083_s8 + $0xb0] sm:$0xff]  ;;  %v629_v8 = vand.u32 15, %v4143_v57  ;;  %v4171_v9 = vadd.s32 168, %v4133_v50  ;;  %v4175_v12 = vadd.s32 120, %v4133_v50 }
  0x15   : > { %v322_v18 = vpack.c.bf16 %v301_v16, %v300_v15  ;;  %3808 = vmatmul.mubr.msk.bf16.vlgmr.msra.gmra.mxu1 %vm343_vm0, %v321_v13  ;;  %v303_v22 = vld [vmem:[%s4083_s8 + $0xb8] sm:$0xff]  ;;  %v288_v23 = vld [vmem:[%s4083_s8 + $0x40] sm:$0xff]  ;;  %v289_v24 = vld [vmem:[%s4083_s8 + $0x48] sm:$0xff]  ;;  %v315_v27 = vpack.c.bf16 %v287_v20, %v286_v19  ;;  %v4178_v13 = vadd.s32 16, %v4133_v50  ;;  %v4181_v14 = vadd.s32 32, %v4133_v50 }
  0x16   : > { %3795 = vmatprep.mubr.msk.bf16.mxu0 %vm343_vm0, %v314_v17  ;;  %v304_v25 = vld [vmem:[%s4083_s8 + $0xc0] sm:$0xff]  ;;  %v305_v26 = vld [vmem:[%s4083_s8 + $0xc8] sm:$0xff]  ;;  %v323_v28 = vpack.c.bf16 %v303_v22, %v302_v21  ;;  %v316_v29 = vpack.c.bf16 %v289_v24, %v288_v23  ;;  %v290_v31 = vld [vmem:[%s4083_s8 + $0x50] sm:$0xff]  ;;  %5668 = vst [vmem:[#allocation3_spill] sm:$0xff] %v4175_v12  ;;  %v643_v16 = vand.u32 15, %v4149_v61  ;;  %vm4270_vm2 = vcmp.lt.s32.totalorder %v629_v8, 15 }
  0x17   : > { %3811 = vmatprep.mubr.msk.bf16.mxu1 %vm343_vm0, %v322_v18  ;;  %v324_v30 = vpack.c.bf16 %v305_v26, %v304_v25  ;;  %v291_v32 = vld [vmem:[%s4083_s8 + $0x58] sm:$0xff]  ;;  %v306_v33 = vld [vmem:[%s4083_s8 + $0xd0] sm:$0xff]  ;;  %v292_v35 = vld [vmem:[%s4083_s8 + $0x60] sm:$0xff]  ;;  %vm4313_vm3 = vcmp.lt.s32.totalorder %v741_v11, 15 }
  0x18   : > { %v307_v34 = vld [vmem:[%s4083_s8 + $0xd8] sm:$0xff]  ;;  %v293_v36 = vld [vmem:[%s4083_s8 + $0x68] sm:$0xff]  ;;  %v308_v37 = vld [vmem:[%s4083_s8 + $0xe0] sm:$0xff]  ;;  %v317_v39 = vpack.c.bf16 %v291_v32, %v290_v31  ;;  %vm4387_vm4 = vcmp.lt.s32.totalorder %v643_v16, 15 }
  0x19   : > { %v309_v38 = vld [vmem:[%s4083_s8 + $0xe8] sm:$0xff]  ;;  %v325_v40 = vpack.c.bf16 %v307_v34, %v306_v33  ;;  %v318_v41 = vpack.c.bf16 %v293_v36, %v292_v35  ;;  %v294_v43 = vld [vmem:[%s4083_s8 + $0x70] sm:$0xff]  ;;  %v295_v44 = vld [vmem:[%s4083_s8 + $0x78] sm:$0xff]  ;;  %v4208_v34 = vadd.s32 160, %v4133_v50  ;;  %v4214_v36 = vadd.s32 72, %v4133_v50 }
  0x1a   : > { %v326_v42 = vpack.c.bf16 %v309_v38, %v308_v37  ;;  %v310_v45 = vld [vmem:[%s4083_s8 + $0xf0] sm:$0xff]  ;;  %v311_v46 = vld [vmem:[%s4083_s8 + $0xf8] sm:$0xff]  ;;  %v319_v47 = vpack.c.bf16 %v295_v44, %v294_v43  ;;  %v4217_v37 = vadd.s32 88, %v4133_v50  ;;  %v4220_v38 = vadd.s32 48, %v4133_v50 }
  0x1b   : > { %v327_v48 = vpack.c.bf16 %v311_v46, %v310_v45  ;;  %v4233_v44 = vadd.s32 176, %v4133_v50 }
  0x1c   : > { %3796 = vmatmul.mubr.msk.bf16.gmra.mxu0 %vm343_vm0, %v315_v27  ;;  %5669 = vst [vmem:[#allocation4_spill] sm:$0xff] %v4217_v37 }
  0x1d   : > { %3812 = vmatmul.mubr.msk.bf16.gmra.mxu1 %vm343_vm0, %v323_v28  ;;  %3799 = vmatprep.mubr.msk.bf16.mxu0 %vm343_vm0, %v316_v29 }
  0x1e   : > { %3815 = vmatprep.mubr.msk.bf16.mxu1 %vm343_vm0, %v324_v30 }
  0x24   : > { %3800 = vmatmul.mubr.msk.bf16.gmra.mxu0 %vm343_vm0, %v317_v39  ;;  %v4223_v39 = vadd.s32 64, %v4133_v50 }
  0x25   : > { %3816 = vmatmul.mubr.msk.bf16.gmra.mxu1 %vm343_vm0, %v325_v40  ;;  %3803 = vmatprep.mubr.msk.bf16.mxu0 %vm343_vm0, %v318_v41 }
  0x26   : > { %3819 = vmatprep.mubr.msk.bf16.mxu1 %vm343_vm0, %v326_v42 }
  0x2c   : > { %3804 = vmatmul.mubr.msk.bf16.gmra.mxu0 %vm343_vm0, %v319_v47 }
  0x2d   : > { %3820 = vmatmul.mubr.msk.bf16.gmra.mxu1 %vm343_vm0, %v327_v48 }
  0xd4   : > { %v3793_v52 = vpop.f32.mrf.mxu0 }
  0xd5   : > { %v3809_v53 = vpop.f32.mrf.mxu1  ;;  %v435_v54 = vadd.f32 %v3793_v52, %v4138_v51 }
  0xd6   : > { %v499_v55 = vadd.f32 %v3809_v53, %v4138_v51  ;;  %v426_v56 = vpop.f32.mrf.mxu0 }
  0xd7   : > { %v490_v58 = vpop.f32.mrf.mxu1  ;;  %v427_v2 = vadd.f32 %v4138_v51, %v426_v56  ;;  %v4167_v6 = vmax.f32 %v435_v54, 0.0  ;;  %v4251_v54 = vadd.s32 80, %v4133_v50  ;;  %v4257_v56 = vadd.s32 192, %v4133_v50 }
  0xd8   : > { %v3794_v60 = vpop.f32.mrf.mxu0  ;;  %v4160_v1 = vmax.f32 %v499_v55, 0.0  ;;  %v491_v25 = vadd.f32 %v4138_v51, %v490_v58  ;;  %v4254_v55 = vadd.s32 96, %v4133_v50 }
  0xd9   : > { %v438_v3 = vadd.f32 %v3794_v60, %v4138_v51  ;;  %v3810_v4 = vpop.f32.mrf.mxu1  ;;  %v4187_v20 = vmax.f32 %v427_v2, 0.0  ;;  %v3642_v27 = vpack.c.bf16 %v4167_v6, %v4167_v6  ;;  %v1229_v33 = vrot.slane %v4167_v6, 1 }
  0xda   : > { %v429_v7 = vpop.f32.mrf.mxu0  ;;  %v3658_v22 = vpack.c.bf16 %v4160_v1, %v4160_v1  ;;  %v502_v26 = vadd.f32 %v3810_v4, %v4138_v51  ;;  %v4235_v45 = vmax.f32 %v491_v25, 0.0 }
  0xdb   : > { %v493_v10 = vpop.f32.mrf.mxu1  ;;  %v4189_v21 = vmax.f32 %v438_v3, 0.0  ;;  %1654 = vrot.lane.b32.xlu1 %v3642_v27, %s4021_s11  ;;  %v430_v40 = vadd.f32 %v4138_v51, %v429_v7  ;;  %v3640_v42 = vpack.c.bf16 %v4187_v20, %v4187_v20  ;;  %v4266_v3 = vadd.s32 112, %v4133_v50 }
  0xdc   : > { %v3797_v15 = vpop.f32.mrf.mxu0  ;;  %1686 = vrot.lane.b32.xlu0 %v3658_v22, %s4021_s11  ;;  %v4237_v46 = vmax.f32 %v502_v26, 0.0  ;;  %v494_v47 = vadd.f32 %v4138_v51, %v493_v10  ;;  %v1245_v10 = vrot.slane %v4160_v1, 1 }
  0xdd   : > { %v3813_v23 = vpop.f32.mrf.mxu1  ;;  %v3643_v41 = vpack.c.bf16 %v4189_v21, %v4189_v21  ;;  %5670 = vst [vmem:[#allocation5_spill] sm:$0xff] %v4266_v3  ;;  %v4268_v4 = vmax.f32 %v430_v40, 0.0  ;;  %v451_v8 = vadd.f32 %v3797_v15, %v4138_v51  ;;  %v1230_v2 = vrot.slane %v4189_v21, 1 }
  0xde   : > { %v4198_v28 = vpop.f32.mrf.mxu0  ;;  %v4277_v26 = vmax.f32 %v494_v47, 0.0  ;;  %v3659_v27 = vpack.c.bf16 %v4237_v46, %v4237_v46  ;;  %v515_v25 = vadd.f32 %v3813_v23, %v4138_v51 }
  0xdf   : > { %v4202_v30 = vpop.f32.mrf.mxu1  ;;  %1656 = vrot.lane.b32.xlu1 %v3643_v41, %s4021_s11  ;;  %v3656_v41 = vpack.c.bf16 %v4235_v45, %v4235_v45  ;;  %v5647_v53 = vrot.slane %v4268_v4, 1  ;;  %v443_v40 = vadd.f32 %v4138_v51, %v4198_v28  ;;  %v4307_v60 = vmax.f32 %v451_v8, 0.0 }
  0xe0   : > { %v4211_v35 = vpop.f32.mrf.mxu0  ;;  %1650 = vrot.lane.b32.xlu0 %v3640_v42, %s4021_s11  ;;  %v3657_v23 = vpack.c.bf16 %v4277_v26, %v4277_v26  ;;  %v507_v58 = vadd.f32 %v4138_v51, %v4202_v30  ;;  %v4320_v15 = vmax.f32 %v515_v25, 0.0  ;;  %v5648_v30 = vrot.slane %v4237_v46, 1 }
  0xe1   : > { %v4230_v43 = vpop.f32.mrf.mxu1  ;;  %v454_v59 = vadd.f32 %v4211_v35, %v4138_v51  ;;  %v1289_v11 = vsel %vm1259_vm1, %v5647_v53, %v1229_v33  ;;  %v1288_v25 = vsel %vm1259_vm1, %v1229_v33, %v1230_v2  ;;  %v5649_v35 = vrot.slane %v4277_v26, 1 }
  0xe2   : > { %v4240_v48 = vpop.f32.mrf.mxu0  ;;  %v518_v24 = vadd.f32 %v4230_v43, %v4138_v51  ;;  %v4344_v29 = vmax.f32 %v507_v58, 0.0 }
  0xe3   : > { %v4247_v52 = vpop.f32.mrf.mxu1  ;;  %1688 = vrot.lane.b32.xlu1 %v3659_v27, %s4021_s11  ;;  %v3641_v27 = vpack.c.bf16 %v4268_v4, %v4268_v4  ;;  %v446_v8 = vadd.f32 %v4138_v51, %v4240_v48  ;;  %v4352_v53 = vmax.f32 %v454_v59, 0.0 }
  0xe4   : > { %v4260_v57 = vpop.f32.mrf.mxu0  ;;  %1682 = vrot.lane.b32.xlu0 %v3656_v41, %s4021_s11  ;;  %v510_v19 = vadd.f32 %v4138_v51, %v4247_v52  ;;  %v4360_v17 = vmax.f32 %v518_v24, 0.0  ;;  %v1273_v24 = vsel %vm1259_vm1, %v5649_v35, %v1245_v10 }
  0xe5   : > { %v3817_v42 = vpop.f32.mrf.mxu1  ;;  %v467_v58 = vadd.f32 %v4260_v57, %v4138_v51  ;;  %v4367_v43 = vmax.f32 %v446_v8, 0.0 }
  0xe6   : > { %v458_v31 = vpop.f32.mrf.mxu0  ;;  %v531_v48 = vadd.f32 %v3817_v42, %v4138_v51  ;;  %v1272_v42 = vsel %vm1259_vm1, %v1245_v10, %v5648_v30  ;;  %v1373_v10 = vsel %vm4313_vm3, %v1273_v24, 0.0 }
  0xe7   : > { %v522_v22 = vpop.f32.mrf.mxu1  ;;  %1684 = vrot.lane.b32.xlu1 %v3657_v23, %s4021_s11  ;;  %v3674_v23 = vpack.c.bf16 %v1288_v25, %v1288_v25  ;;  %v459_v52 = vadd.f32 %v4138_v51, %v458_v31  ;;  %v4382_v8 = vmax.f32 %v467_v58, 0.0  ;;  %v3689_v16 = vpack.c.bf16 %v1373_v10, %v1373_v10 }
  0xe8   : > { %v3802_v47 = vpop.f32.mrf.mxu0  ;;  %1652 = vrot.lane.b32.xlu0 %v3641_v27, %s4021_s11  ;;  %v4337_v27 = vmax.f32 %v443_v40, 0.0  ;;  %v1357_v40 = vsel %vm4270_vm2, %v1289_v11, 0.0  ;;  %v523_v32 = vadd.f32 %v4138_v51, %v522_v22  ;;  %v4392_v59 = vmax.f32 %v531_v48, 0.0 }
  0xe9   : > { %v3818_v18 = vpop.f32.mrf.mxu1  ;;  %v3673_v25 = vpack.c.bf16 %v1357_v40, %v1357_v40  ;;  %v4380_v40 = vmax.f32 %v510_v19, 0.0  ;;  %v4397_v58 = vmax.f32 %v459_v52, 0.0  ;;  %v5680_v10 = vand.u32 15, %v4152_v62 }
  0xea   : > { %v461_v41 = vpop.f32.mrf.mxu0  ;;  %v5650_v33 = vrot.slane %v4337_v27, 1  ;;  %5677 = vst [vmem:[#allocation6_spill] sm:$0xff] %v4392_v59  ;;  %v4402_v7 = vmax.f32 %v523_v32, 0.0  ;;  %v534_v48 = vadd.f32 %v3818_v18, %v4138_v51  ;;  %v3646_v18 = vpack.c.bf16 %v4307_v60, %v4307_v60 }
  0xeb   : > { %v525_v11 = vpop.f32.mrf.mxu1  ;;  %1877 = vrot.lane.b32.xlu1 %v3673_v25, %s4022_s12  ;;  %v470_v25 = vadd.f32 %v3802_v47, %v4138_v51  ;;  %v462_v47 = vadd.f32 %v4138_v51, %v461_v41  ;;  %v3647_v41 = vpack.c.bf16 %v4352_v53, %v4352_v53  ;;  %vm4441_vm5 = vcmp.lt.s32.totalorder %v5680_v10, 15 }
  0xec   : > { %1879 = vrot.lane.b32.xlu0 %v3674_v23, %s4022_s12  ;;  %v3805_v57 = vpop.f32.mrf.mxu0  ;;  %v3690_v23 = vpack.c.bf16 %v1272_v42, %v1272_v42  ;;  %5678 = vst [vmem:[#allocation7_spill] sm:$0xff] %v4402_v7  ;;  %v526_v32 = vadd.f32 %v4138_v51, %v525_v11  ;;  %v4424_v42 = vmax.f32 %v534_v48, 0.0  ;;  %v1287_v48 = vsel %vm1259_vm1, %v1230_v2, %v5650_v33 }
  0xed   : > { %v3821_v31 = vpop.f32.mrf.mxu1  ;;  %v4418_v30 = vmax.f32 %v470_v25, 0.0  ;;  %v483_v11 = vadd.f32 %v3805_v57, %v4138_v51  ;;  %v3663_v62 = vpack.c.bf16 %v4360_v17, %v4360_v17  ;;  %v5684_v10 = vrot.slane %v4268_v4, 1 }
  0xee   : > { %v474_v61 = vpop.f32.mrf.mxu0  ;;  %5679 = vst [vmem:[#allocation8_spill] sm:$0xff] %v4424_v42  ;;  %v547_v25 = vadd.f32 %v3821_v31, %v4138_v51  ;;  %v4446_v31 = vmax.f32 %v526_v32, 0.0  ;;  %v5685_v33 = vrot.slane %v4187_v20, 1  ;;  %v5694_v52 = vrot.slane %v4277_v26, 1 }
  0xef   : > { %1909 = vrot.lane.b32.xlu1 %v3689_v16, %s4022_s12  ;;  %v538_v24 = vpop.f32.mrf.mxu1  ;;  %v475_v28 = vadd.f32 %v4138_v51, %v474_v61  ;;  %v4463_v35 = vmax.f32 %v483_v11, 0.0  ;;  %v5732_v11 = vrot.slane %v4402_v7, 1  ;;  %v5764_v57 = vrot.slane %v4160_v1, 7 }
  0xf0   : > { %1911 = vrot.lane.b32.xlu0 %v3690_v23, %s4022_s12  ;;  %v3806_v19 = vpop.f32.mrf.mxu0  ;;  %v4428_v23 = vmax.f32 %v462_v47, 0.0  ;;  %5683 = vst [vmem:[#allocation9_spill] sm:$0xff] %v4446_v31  ;;  %v539_v16 = vadd.f32 %v4138_v51, %v538_v24  ;;  %v1290_v32 = vsel %vm1259_vm1, %v5685_v33, %v5684_v10  ;;  %v1359_v24 = vsel %vm4387_vm4, %v1287_v48, 0.0 }
  0xf1   : > { %v486_v61 = vadd.f32 %v3806_v19, %v4138_v51  ;;  %v3822_v2 = vpop.f32.mrf.mxu1  ;;  %v4470_v3 = vmax.f32 %v547_v25, 0.0  ;;  %v4472_v37 = vmax.f32 %v475_v28, 0.0  ;;  %v5687_v33 = vand.u32 15, %v4155_v63 }
  0xf2   : > { %v477_v47 = vpop.f32.mrf.mxu0  ;;  %v550_v25 = vadd.f32 %v3822_v2, %v4138_v51  ;;  %v3672_v28 = vpack.c.bf16 %v1290_v32, %v1290_v32  ;;  %v4492_v63 = vmax.f32 %v539_v16, 0.0  ;;  %v1252_v12 = vrot.slane %v4446_v31, 1 }
  0xf3   : > { %1664 = vrot.lane.b32.xlu1 %v3647_v41, %s4021_s11  ;;  %5686 = vst [vmem:[#allocation10_spill] sm:$0xff] %v4472_v37  ;;  %vm4477_vm6 = vcmp.lt.s32.totalorder %v5687_v33, 15  ;;  %v4487_v48 = vmax.f32 %v486_v61, 0.0  ;;  %v478_v10 = vadd.f32 %v4138_v51, %v477_v47  ;;  %v3675_v33 = vpack.c.bf16 %v1359_v24, %v1359_v24 }
  0xf4   : > { %1662 = vrot.lane.b32.xlu0 %v3646_v18, %s4021_s11  ;;  %v3662_v18 = vpack.c.bf16 %v4320_v15, %v4320_v15  ;;  %5693 = vst [vmem:[#allocation11_spill] sm:$0xff] %v4492_v63  ;;  %v1241_v2 = vrot.slane %v4463_v35, 1  ;;  %v5655_v24 = vrot.slane %v4472_v37, 1  ;;  %v5698_v16 = vand.u32 15, %v4165_v5 }
  0xf5   : > { %v4504_v47 = vmax.f32 %v478_v10, 0.0  ;;  %v5654_v19 = vrot.slane %v4487_v48, 1  ;;  %v5726_v31 = vrot.slane %v4352_v53, 1  ;;  %v4645_v22 = vsel %vm1259_vm1, %v5732_v11, %v1252_v12 }
  0xf6   : > { %vm4521_vm8 = vcmp.lt.s32.totalorder %v5698_v16, 15  ;;  %5733 = vst [vmem:[#allocation17_spill] sm:$0xff] %v4645_v22  ;;  %v5740_v11 = vrot.slane %v4352_v53, 1  ;;  %v5756_v32 = vrot.slane %v4167_v6, 7 }
  0xf7   : > { %1696 = vrot.lane.b32.xlu1 %v3663_v62, %s4021_s11  ;;  %v5701_v62 = vand.u32 15, %v4158_v0  ;;  %v541_v0 = vpop.f32.mrf.mxu1 }
  0xf8   : > { %1694 = vrot.lane.b32.xlu0 %v3662_v18, %s4021_s11  ;;  %v5690_v18 = vand.u32 15, %v4171_v9  ;;  %v5695_v9 = vrot.slane %v4235_v45, 1 }
  0xf9   : > { %vm4528_vm9 = vcmp.gt.s32.totalorder %v5701_v62, 0  ;;  %v4551_v62 = vsel %vm1259_vm1, %v1241_v2, %v5654_v19  ;;  %v3644_v19 = vpack.c.bf16 %v4337_v27, %v4337_v27 }
  0xfa   : > { %vm4483_vm7 = vcmp.lt.s32.totalorder %v5690_v18, 15  ;;  %v1274_v18 = vsel %vm1259_vm1, %v5695_v9, %v5694_v52  ;;  %v5696_v52 = vrot.slane %v4344_v29, 1  ;;  %v5697_v9 = vrot.slane %v4237_v46, 1  ;;  %5707 = vst [vmem:[#allocation12_spill] sm:$0xff] %v4551_v62 }
  0xfb   : > { %1881 = vrot.lane.b32.xlu1 %v3675_v33, %s4022_s12  ;;  %v3688_v10 = vpack.c.bf16 %v1274_v18, %v1274_v18  ;;  %v1240_v33 = vrot.slane %v4504_v47, 1  ;;  %v5714_v18 = vrot.slane %v4367_v43, 1 }
  0xfc   : > { %1875 = vrot.lane.b32.xlu0 %v3672_v28, %s4022_s12  ;;  %v1271_v61 = vsel %vm1259_vm1, %v5697_v9, %v5696_v52  ;;  %v4517_v28 = vmax.f32 %v550_v25, 0.0  ;;  %v5704_v52 = vand.u32 15, %v4178_v13  ;;  %v3645_v9 = vpack.c.bf16 %v4367_v43, %v4367_v43 }
  0xfd   : > { %v1375_v13 = vsel %vm4441_vm5, %v1271_v61, 0.0  ;;  %v4561_v16 = vsel %vm1259_vm1, %v5655_v24, %v1240_v33  ;;  %v1255_v61 = vrot.slane %v4492_v63, 1  ;;  %v5715_v24 = vrot.slane %v4320_v15, 1 }
  0xfe   : > { %vm4534_vm10 = vcmp.gt.s32.totalorder %v5704_v52, 0  ;;  %v4555_v52 = vsel %vm1259_vm1, %v1240_v33, %v1241_v2  ;;  %5709 = vst [vmem:[#allocation14_spill] sm:$0xff] %v4561_v16  ;;  %v5713_v2 = vrot.slane %v4307_v60, 1  ;;  %v3661_v63 = vpack.c.bf16 %v4380_v40, %v4380_v40 }
  0xff   : > { %5708 = vst [vmem:[#allocation13_spill] sm:$0xff] %v4555_v52  ;;  %1660 = vrot.lane.b32.xlu1 %v3645_v9, %s4021_s11  ;;  %v5717_v9 = vand.u32 15, %v4214_v36  ;;  %v1258_v36 = vrot.slane %v4517_v28, 1  ;;  %v5758_v37 = vrot.slane %v4517_v28, 7  ;;  %v5852_v52 = vld [vmem:[#allocation3_spill] sm:$0xff] }
 0x100   : > { %1907 = vrot.lane.b32.xlu0 %v3688_v10, %s4022_s12  ;;  %v5710_v10 = vand.u32 15, %v4133_v50  ;;  %v1285_v33 = vsel %vm1259_vm1, %v5714_v18, %v5713_v2  ;;  %v5720_v18 = vrot.slane %v4402_v7, 1  ;;  %v5721_v2 = vrot.slane %v4360_v17, 1 }
 0x101   : > { %vm4589_vm13 = vcmp.lt.s32.totalorder %v5717_v9, 15  ;;  %v3691_v9 = vpack.c.bf16 %v1375_v13, %v1375_v13  ;;  %v5728_v13 = vrot.slane %v4367_v43, 1  ;;  %v5757_v7 = vrot.slane %v4187_v20, 7 }
 0x102   : > { %vm4565_vm12 = vcmp.gt.s32.totalorder %v5710_v10, 0  ;;  %v5716_v10 = vrot.slane %v4380_v40, 1  ;;  %v4599_v62 = vsel %vm1259_vm1, %v5721_v2, %v5720_v18  ;;  %v5727_v18 = vrot.slane %v4307_v60, 1 }
 0x103   : > { %5722 = vst [vmem:[#allocation15_spill] sm:$0xff] %v4599_v62  ;;  %v5729_v2 = vrot.slane %v4337_v27, 1  ;;  %1913 = vrot.lane.b32.xlu1 %v3691_v9, %s4022_s12  ;;  %v1098_v41 = vsel %vm1066_vm11, %v5758_v37, %v5757_v7  ;;  %v5763_v7 = vrot.slane %v4237_v46, 7 }
 0x104   : > { %v1269_v5 = vsel %vm1259_vm1, %v5716_v10, %v5715_v24  ;;  %v542_v24 = vadd.f32 %v4138_v51, %v541_v0  ;;  %v5723_v10 = vand.u32 15, %v4244_v49  ;;  %v1284_v51 = vsel %vm1259_vm1, %v5727_v18, %v5726_v31  ;;  %1658 = vrot.lane.b32.xlu0 %v3644_v19, %s4021_s11 }
 0x105   : > { %v1361_v49 = vsel %vm4477_vm6, %v1285_v33, 0.0  ;;  %v4622_v0 = vsel %vm4483_vm7, %v1269_v5, 0.0  ;;  %v5730_v31 = vrot.slane %v4392_v59, 1  ;;  %v5734_v5 = vrot.slane %v4424_v42, 1 }
 0x106   : > { %vm4604_vm15 = vcmp.gt.s32.totalorder %v5723_v10, 0  ;;  %v4630_v10 = vsel %vm1259_vm1, %v5729_v2, %v5728_v13  ;;  %v4632_v62 = vmax.f32 %v542_v24, 0.0  ;;  %v3660_v13 = vpack.c.bf16 %v4344_v29, %v4344_v29 }
 0x107   : > { %v4639_v19 = vsel %vm1259_vm1, %v1252_v12, %v5730_v31  ;;  %v4651_v33 = vsel %vm1259_vm1, %v5734_v5, %v1255_v61  ;;  %v5736_v24 = vmov %v5734_v5  ;;  %v5737_v9 = vmov %v5730_v31  ;;  %1692 = vrot.lane.b32.xlu1 %v3661_v63, %s4021_s11 }
 0x108   : > { %5731 = vst [vmem:[#allocation16_spill] sm:$0xff] %v4639_v19  ;;  %5735 = vst [vmem:[#allocation18_spill] sm:$0xff] %v4651_v33  ;;  %v4659_v18 = vsel %vm1259_vm1, %v5737_v9, %v5736_v24  ;;  %v3678_v2 = vpack.c.bf16 %v1284_v51, %v1284_v51  ;;  %v3650_v12 = vpack.c.bf16 %v4382_v8, %v4382_v8  ;;  %v5739_v31 = vrot.slane %v4397_v58, 1 }
 0x109   : > { %5738 = vst [vmem:[#allocation19_spill] sm:$0xff] %v4659_v18  ;;  %v3677_v33 = vpack.c.bf16 %v1361_v49, %v1361_v49  ;;  %v3693_v22 = vpack.c.bf16 %v4622_v0, %v4622_v0  ;;  %v1256_v9 = vrot.slane %v4632_v62, 1  ;;  %v5741_v51 = vand.u32 15, %v4220_v38  ;;  %1690 = vrot.lane.b32.xlu0 %v3660_v13, %s4021_s11 }
 0x10a   : > { %v1283_v5 = vsel %vm1259_vm1, %v5740_v11, %v5739_v31  ;;  %v5744_v49 = vrot.slane %v4380_v40, 1  ;;  %v5745_v0 = vrot.slane %v4344_v29, 1  ;;  %v5746_v24 = vrot.slane %v4160_v1, 7 }
 0x10b   : > { %vm4678_vm2 = vcmp.gt.s32.totalorder %v5741_v51, 0  ;;  %v5747_v38 = vrot.slane %v4277_v26, 7  ;;  %v5748_v13 = vrot.slane %v4167_v6, 7  ;;  %v5749_v19 = vrot.slane %v4268_v4, 7  ;;  %1885 = vrot.lane.b32.xlu1 %v3677_v33, %s4022_s12 }
 0x10c   : > { %v4691_v11 = vsel %vm1259_vm1, %v5745_v0, %v5744_v49  ;;  %v5750_v59 = vand.u32 15, %v4233_v44  ;;  %v4714_v49 = vsel %vm4521_vm8, %v1283_v5, 0.0  ;;  %v5754_v0 = vrot.slane %v4428_v23, 1 }
 0x10d   : > { %v1080_v51 = vsel %vm1066_vm11, %v5747_v38, %v5746_v24  ;;  %v1096_v31 = vsel %vm1066_vm11, %v5749_v19, %v5748_v13  ;;  %v5753_v24 = vrot.slane %v4382_v8, 1  ;;  %v5755_v63 = vrot.slane %v4189_v21, 7  ;;  %1887 = vrot.lane.b32.xlu0 %v3678_v2, %s4022_s12 }
 0x10e   : > { %vm4707_vm3 = vcmp.gt.s32.totalorder %v5750_v59, 0  ;;  %v1181_v44 = vsel %vm4528_vm9, %v1080_v51, 0.0  ;;  %v1165_v59 = vsel %vm4534_vm10, %v1096_v31, 0.0  ;;  %v5759_v51 = vand.u32 15, %v4181_v14 }
 0x10f   : > { %v1281_v38 = vsel %vm1259_vm1, %v5754_v0, %v5753_v24  ;;  %v3626_v19 = vpack.c.bf16 %v1181_v44, %v1181_v44  ;;  %v3610_v13 = vpack.c.bf16 %v1165_v59, %v1165_v59  ;;  %v1095_v5 = vsel %vm1066_vm11, %v5756_v32, %v5755_v63  ;;  %1917 = vrot.lane.b32.xlu1 %v3693_v22, %s4022_s12  ;;  %v3977_v22 = vld [vmem:[%s5641_s2] sm:$0x3f]  }
 0x110   : > { %vm4740_vm4 = vcmp.gt.s32.totalorder %v5759_v51, 0  ;;  %v3692_v31 = vpack.c.bf16 %v4691_v11, %v4691_v11  ;;  %v3611_v6 = vpack.c.bf16 %v1095_v5, %v1095_v5  ;;  %v1163_v24 = vsel %vm4565_vm12, %v1098_v41, 0.0  ;;  %v5814_v11 = vld [vmem:[#allocation4_spill] sm:$0xff] }
 0x111   : > { %v5762_v0 = vrot.slane %v4470_v3, 1  ;;  %1540 = vst.msk [vmem:[#allocation2 + $0x50] sm:$0xf] %vm1521_vm14, %v3626_v19  ;;  %1524 = vst.msk [vmem:[#allocation2 + $0x10] sm:$0xf] %vm1521_vm14, %v3610_v13  ;;  %v3608_v14 = vpack.c.bf16 %v1163_v24, %v1163_v24  ;;  %v4759_v37 = vsel %vm1259_vm1, %v1255_v61, %v1256_v9  ;;  %v1079_v59 = vsel %vm1066_vm11, %v5764_v57, %v5763_v7 }
 0x112   : > { %v5765_v63 = vrot.slane %v4235_v45, 7  ;;  %v5766_v2 = vrot.slane %v4487_v48, 7  ;;  %v4776_v61 = vsel %vm4589_vm13, %v1281_v38, 0.0  ;;  %v5768_v1 = vrot.slane %v4382_v8, 1  ;;  %1525 = vst.msk [vmem:[#allocation2 + $0x14] sm:$0xf] %vm1521_vm14, %v3611_v6  ;;  %1670 = vrot.lane.b32.xlu0 %v3650_v12, %s4021_s11 }
 0x113   : > { %v4752_v44 = vsel %vm1259_vm1, %v1256_v9, %v5762_v0  ;;  %v5767_v9 = vrot.slane %v4418_v30, 1  ;;  %v3627_v32 = vpack.c.bf16 %v1079_v59, %v1079_v59  ;;  %v5769_v33 = vand.u32 15, %v4208_v34  ;;  %1522 = vst.msk [vmem:[#allocation2 + $0x8] sm:$0xf] %vm1521_vm14, %v3608_v14 }
 0x114   : > { %v1082_v19 = vsel %vm1066_vm11, %v5766_v2, %v5765_v63  ;;  %v5772_v38 = vand.u32 15, %v4251_v54  ;;  %v5775_v6 = vrot.slane %v4187_v20, 1  ;;  %v5776_v34 = vmov %v5762_v0 }
 0x115   : > { %v4784_v13 = vsel %vm1259_vm1, %v5768_v1, %v5767_v9  ;;  %v1179_v5 = vsel %vm4604_vm15, %v1082_v19, 0.0  ;;  %vm4791_vm5 = vcmp.gt.s32.totalorder %v5769_v33, 0  ;;  %v4812_v24 = vsel %vm1259_vm1, %v5776_v34, %v1258_v36  ;;  %1541 = vst.msk [vmem:[#allocation2 + $0x54] sm:$0xf] %vm1521_vm14, %v3627_v32  ;;  %v3978_v34 = vld [vmem:[%s5641_s2 + $0x8] sm:$0x3f]  }
 0x116   : > { %vm4797_vm6 = vcmp.gt.s32.totalorder %v5772_v38, 0  ;;  %v3624_v51 = vpack.c.bf16 %v1179_v5, %v1179_v5  ;;  %v4806_v16 = vsel %vm1259_vm1, %v1258_v36, %v5775_v6  ;;  %v5777_v54 = vrot.slane %v4277_v26, 7 }
 0x117   : > { %v5778_v0 = vmov %v5765_v63  ;;  %v3679_v7 = vpack.c.bf16 %v4714_v49, %v4714_v49  ;;  %v3649_v57 = vpack.c.bf16 %v4428_v23, %v4428_v23  ;;  %v3648_v59 = vpack.c.bf16 %v4397_v58, %v4397_v58 }
 0x118   : > { %v1081_v14 = vsel %vm1066_vm11, %v5778_v0, %v5777_v54  ;;  %v5779_v63 = vand.u32 15, %v4223_v39  ;;  %v1047_v2 = vrot.slane %v4504_v47, 7  ;;  %v3681_v19 = vpack.c.bf16 %v4776_v61, %v4776_v61  ;;  %1538 = vst.msk [vmem:[#allocation2 + $0x48] sm:$0xf] %vm1521_vm14, %v3624_v51 }
 0x119   : > { %v3625_v36 = vpack.c.bf16 %v1081_v14, %v1081_v14  ;;  %v3682_v9 = vpack.c.bf16 %v4784_v13, %v4784_v13  ;;  %v5782_v1 = vrot.slane %v4268_v4, 7  ;;  %v5783_v39 = vrot.slane %v4187_v20, 7 }
 0x11a   : > { %vm4829_vm7 = vcmp.gt.s32.totalorder %v5779_v63, 0  ;;  %v1063_v12 = vrot.slane %v4632_v62, 7  ;;  %v5784_v33 = vrot.slane %v4352_v53, 7  ;;  %v5785_v38 = vrot.slane %v4307_v60, 7 }
 0x11b   : > { %v1097_v32 = vsel %vm1066_vm11, %v5783_v39, %v5782_v1  ;;  %1539 = vst.msk [vmem:[#allocation2 + $0x4c] sm:$0xf] %vm1521_vm14, %v3625_v36  ;;  %v5787_v20 = vrot.slane %v4367_v43, 7  ;;  %v5788_v14 = vrot.slane %v4360_v17, 7  ;;  %v5789_v60 = vrot.slane %v4320_v15, 7 }
 0x11c   : > { %v3609_v5 = vpack.c.bf16 %v1097_v32, %v1097_v32  ;;  %v1091_v51 = vsel %vm1066_vm11, %v5785_v38, %v5784_v33  ;;  %v5786_v4 = vmov %v5785_v38  ;;  %v5791_v1 = vrot.slane %v4380_v40, 7 }
 0x11d   : > { %v1092_v6 = vsel %vm1066_vm11, %v5787_v20, %v5786_v4  ;;  %v3615_v54 = vpack.c.bf16 %v1091_v51, %v1091_v51  ;;  %v1075_v36 = vsel %vm1066_vm11, %v5789_v60, %v5788_v14  ;;  %v5790_v63 = vmov %v5789_v60 }
 0x11e   : > { %v1169_v0 = vsel %vm4678_vm2, %v1092_v6, 0.0  ;;  %v1076_v39 = vsel %vm1066_vm11, %v5791_v1, %v5790_v63  ;;  %v5792_v32 = vand.u32 15, %v4254_v55  ;;  %1523 = vst.msk [vmem:[#allocation2 + $0xc] sm:$0xf] %vm1521_vm14, %v3609_v5  ;;  %v3631_v38 = vpack.c.bf16 %v1075_v36, %v1075_v36 }
 0x11f   : > { %v3614_v18 = vpack.c.bf16 %v1169_v0, %v1169_v0  ;;  %v1185_v51 = vsel %vm4707_vm3, %v1076_v39, 0.0  ;;  %v5795_v4 = vmov %v5787_v20  ;;  %v5796_v20 = vrot.slane %v4337_v27, 7  ;;  %1529 = vst.msk [vmem:[#allocation2 + $0x24] sm:$0xf] %vm1521_vm14, %v3615_v54 }
 0x120   : > { %vm4883_vm8 = vcmp.gt.s32.totalorder %v5792_v32, 0  ;;  %v5797_v55 = vpack.c.bf16 %v4630_v10, %v4630_v10  ;;  %v3630_v5 = vpack.c.bf16 %v1185_v51, %v1185_v51  ;;  %vm2177_vm9 = vcmask 1045504   ;;  %1545 = vst.msk [vmem:[#allocation2 + $0x64] sm:$0xf] %vm1521_vm14, %v3631_v38 }
 0x121   : > { %v1093_v6 = vsel %vm1066_vm11, %v5796_v20, %v5795_v4  ;;  %v5798_v42 = vmov %v5796_v20  ;;  %v5799_v14 = vrot.slane %v4189_v21, 7  ;;  %v5800_v60 = vand.u32 15, %v4257_v56  ;;  %1528 = vst.msk [vmem:[#allocation2 + $0x20] sm:$0xf] %vm1521_vm14, %v3614_v18  ;;  %3962 = vmatprep.subr.msk.bf16.mxu0 %vm2177_vm9, %v3977_v22  ;;  %3961 = vmatprep.subr.msk.bf16.mxu1 %vm2177_vm9, %v3978_v34 }
 0x122   : > { %1883 = vrot.lane.b32.xlu0 %v5797_v55, %s4022_s12  ;;  %v3613_v0 = vpack.c.bf16 %v1093_v6, %v1093_v6  ;;  %v5803_v10 = vpack.c.bf16 %v4418_v30, %v4418_v30  ;;  %v2356_v21 = vsel %vm2177_vm9, %v3977_v22, 0  ;;  %v2179_v27 = vsel %vm2177_vm9, %v3978_v34, 0  ;;  %1544 = vst.msk [vmem:[#allocation2 + $0x60] sm:$0xf] %vm1521_vm14, %v3630_v5 }
 0x123   : > { %v1094_v43 = vsel %vm1066_vm11, %v5799_v14, %v5798_v42  ;;  %vm4909_vm10 = vcmp.gt.s32.totalorder %v5800_v60, 0  ;;  %vm1388_vm12 = vcmask 93184   ;;  %3858 = vmatpush3.bf16.msra.mxu0 %v2356_v21  ;;  %vm2128_vm13 = vcmask 97280   ;;  %3824 = vmatpush3.bf16.msra.mxu1 %v2179_v27  ;;  %v5822_v27 = vld [vmem:[#allocation5_spill] sm:$0xff] }
 0x124   : > { %1672 = vrot.lane.b32.xlu1 %v5803_v10, %s4021_s11  ;;  %v1167_v56 = vsel %vm4740_vm4, %v1094_v43, 0.0  ;;  %1527 = vst.msk [vmem:[#allocation2 + $0x1c] sm:$0xf] %vm1521_vm14, %v3613_v0  ;;  %v5804_v63 = vmov %v5791_v1  ;;  %v5805_v1 = vrot.slane %v4344_v29, 7  ;;  %v4023_v22 = vmov 0  }
 0x125   : > { %v3612_v54 = vpack.c.bf16 %v1167_v56, %v1167_v56  ;;  %1389 = vst.msk [vmem:[#allocation2] sm:$0xf] %vm1388_vm12, %v4023_v22  ;;  %1390 = vst.msk [vmem:[#allocation2 + $0x4] sm:$0xf] %vm1388_vm12, %v4023_v22  ;;  %v5807_v34 = vrot.slane %v4237_v46, 7  ;;  %v5808_v40 = vrot.slane %v4382_v8, 7  ;;  %v3654_v61 = vpack.c.bf16 %v4463_v35, %v4463_v35 }
 0x126   : > { %v1077_v25 = vsel %vm1066_vm11, %v5805_v1, %v5804_v63  ;;  %1391 = vst.msk [vmem:[#allocation2 + $0x88] sm:$0xf] %vm1388_vm12, %v4023_v22  ;;  %1392 = vst.msk [vmem:[#allocation2 + $0x8c] sm:$0xf] %vm1388_vm12, %v4023_v22  ;;  %v5806_v32 = vmov %v5805_v1  ;;  %v5809_v38 = vrot.slane %v4428_v23, 7  ;;  %v5810_v4 = vrot.slane %v4418_v30, 7  ;;  %1915 = vrot.lane.b32.xlu0 %v3692_v31, %s4022_s12 }
 0x127   : > { %v3629_v39 = vpack.c.bf16 %v1077_v25, %v1077_v25  ;;  %v1078_v18 = vsel %vm1066_vm11, %v5807_v34, %v5806_v32  ;;  %v5811_v20 = vmov %v5808_v40  ;;  %1526 = vst.msk [vmem:[#allocation2 + $0x18] sm:$0xf] %vm1521_vm14, %v3612_v54  ;;  %v5813_v8 = vrot.slane %v4397_v58, 7  ;;  %v5825_v22 = vld [vmem:[#allocation10_spill] sm:$0xff] }
 0x128   : > { %v1088_v51 = vsel %vm1066_vm11, %v5809_v38, %v5808_v40  ;;  %v1087_v6 = vsel %vm1066_vm11, %v5811_v20, %v5810_v4  ;;  %v1183_v29 = vsel %vm4791_vm5, %v1078_v18, 0.0  ;;  %v5812_v5 = vmov %v5809_v38  ;;  %1889 = vrot.lane.b32.xlu1 %v3679_v7, %s4022_s12  ;;  %v3984_v18 = vld [vmem:[%s5641_s2 + $0x10] sm:$0x3f]   ;;  %v5829_v20 = vld [vmem:[#allocation9_spill] sm:$0xff] }
 0x129   : > { %v1173_v46 = vsel %vm4797_vm6, %v1088_v51, 0.0  ;;  %v3619_v55 = vpack.c.bf16 %v1087_v6, %v1087_v6  ;;  %v1089_v0 = vsel %vm1066_vm11, %v5813_v8, %v5812_v5  ;;  %v5815_v31 = vand.u32 15, %v5814_v11  ;;  %1543 = vst.msk [vmem:[#allocation2 + $0x5c] sm:$0xf] %vm1521_vm14, %v3629_v39  ;;  %v5831_v6 = vld [vmem:[#allocation7_spill] sm:$0xff]  ;;  %v5835_v11 = vld [vmem:[#allocation8_spill] sm:$0xff]  ;;  %3963 = vmatprep.subr.msk.bf16.mxu1 %vm2177_vm9, %v3984_v18 }
 0x12a   : > { %v3628_v41 = vpack.c.bf16 %v1183_v29, %v1183_v29  ;;  %v3618_v42 = vpack.c.bf16 %v1173_v46, %v1173_v46  ;;  %v3617_v14 = vpack.c.bf16 %v1089_v0, %v1089_v0  ;;  %v5818_v43 = vmov %v5813_v8  ;;  %1666 = vrot.lane.b32.xlu0 %v3648_v59, %s4021_s11 }
 0x12b   : > { %vm4972_vm15 = vcmp.lt.s32.totalorder %v5815_v31, 15  ;;  %v5819_v60 = vrot.slane %v4352_v53, 7  ;;  %1533 = vst.msk [vmem:[#allocation2 + $0x34] sm:$0xf] %vm1521_vm14, %v3619_v55  ;;  %v5820_v7 = vrot.slane %v4487_v48, 7  ;;  %v5821_v21 = vrot.slane %v4463_v35, 7 }
 0x12c   : > { %v5823_v54 = vand.u32 15, %v5822_v27  ;;  %1542 = vst.msk [vmem:[#allocation2 + $0x58] sm:$0xf] %vm1521_vm14, %v3628_v41  ;;  %1532 = vst.msk [vmem:[#allocation2 + $0x30] sm:$0xf] %vm1521_vm14, %v3618_v42  ;;  %v5826_v39 = vrot.slane %v5825_v22, 7  ;;  %v5828_v51 = vmov %v5810_v4  ;;  %1668 = vrot.lane.b32.xlu1 %v3649_v57, %s4021_s11 }
 0x12d   : > { %v1090_v10 = vsel %vm1066_vm11, %v5819_v60, %v5818_v43  ;;  %v1083_v56 = vsel %vm1066_vm11, %v5821_v21, %v5820_v7  ;;  %v5824_v53 = vmov %v5821_v21  ;;  %1531 = vst.msk [vmem:[#allocation2 + $0x2c] sm:$0xf] %vm1521_vm14, %v3617_v14  ;;  %v5832_v29 = vrot.slane %v5831_v6, 7  ;;  %v5837_v41 = vld [vmem:[#allocation6_spill] sm:$0xff]  ;;  %v3979_v60 = vld [vmem:[#allocation2] sm:$0xff]  }
 0x12e   : > { %v1171_v49 = vsel %vm4829_vm7, %v1090_v10, 0.0  ;;  %vm1016_vm2 = vcmp.gt.s32.totalorder %v5823_v54, 0  ;;  %v1084_v63 = vsel %vm1066_vm11, %v1047_v2, %v5824_v53  ;;  %v3623_v1 = vpack.c.bf16 %v1083_v56, %v1083_v56  ;;  %v5841_v56 = vld [vmem:[#allocation11_spill] sm:$0xff]  ;;  %1895 = vrot.lane.b32.xlu0 %v3682_v9, %s4022_s12  ;;  %3859 = vmatprep.mubr.msk.bf16.mxu0 %vm2128_vm13, %v3979_v60 }
 0x12f   : > { %v3616_v26 = vpack.c.bf16 %v1171_v49, %v1171_v49  ;;  %v1177_v25 = vsel %vm1016_vm2, %v1084_v63, 0.0  ;;  %v1085_v32 = vsel %vm1066_vm11, %v5826_v39, %v1047_v2  ;;  %v5827_v38 = vmov %v5826_v39 }
 0x130   : > { %v3622_v34 = vpack.c.bf16 %v1177_v25, %v1177_v25  ;;  %v3621_v40 = vpack.c.bf16 %v1085_v32, %v1085_v32  ;;  %v1086_v4 = vsel %vm1066_vm11, %v5828_v51, %v5827_v38  ;;  %v5830_v2 = vrot.slane %v5829_v20, 7  ;;  %1537 = vst.msk [vmem:[#allocation2 + $0x44] sm:$0xf] %vm1521_vm14, %v3623_v1  ;;  %1893 = vrot.lane.b32.xlu1 %v3681_v19, %s4022_s12 }
 0x131   : > { %1530 = vst.msk [vmem:[#allocation2 + $0x28] sm:$0xf] %vm1521_vm14, %v3616_v26  ;;  %v1175_v46 = vsel %vm4883_vm8, %v1086_v4, 0.0  ;;  %v5833_v5 = vmov %v5832_v29  ;;  %v5834_v8 = vrot.slane %v4360_v17, 7  ;;  %v5836_v31 = vrot.slane %v5835_v11, 7 }
 0x132   : > { %v1073_v59 = vsel %vm1066_vm11, %v5832_v29, %v5830_v2  ;;  %v5838_v42 = vrot.slane %v5837_v41, 7  ;;  %v5839_v14 = vrot.slane %v5825_v22, 1  ;;  %v5840_v33 = vrot.slane %v4418_v30, 1  ;;  %1536 = vst.msk [vmem:[#allocation2 + $0x40] sm:$0xf] %vm1521_vm14, %v3622_v34  ;;  %1678 = vrot.lane.b32.xlu0 %v3654_v61, %s4021_s11 }
 0x133   : > { %v3633_v55 = vpack.c.bf16 %v1073_v59, %v1073_v59  ;;  %v1074_v0 = vsel %vm1066_vm11, %v5834_v8, %v5833_v5  ;;  %v5057_v10 = vsel %vm2177_vm9, %v3984_v18, 0  ;;  %1535 = vst.msk [vmem:[#allocation2 + $0x3c] sm:$0xf] %vm1521_vm14, %v3621_v40  ;;  %v3620_v49 = vpack.c.bf16 %v1175_v46, %v1175_v46 }
 0x134   : > { %v1071_v57 = vsel %vm1066_vm11, %v5838_v42, %v5836_v31  ;;  %v1279_v43 = vsel %vm1259_vm1, %v5840_v33, %v5839_v14  ;;  %v1187_v30 = vsel %vm4909_vm10, %v1074_v0, 0.0  ;;  %v612_v21 = vadd.s32 208, %v4133_v50 }
 0x135   : > { %v3635_v7 = vpack.c.bf16 %v1071_v57, %v1071_v57  ;;  %1547 = vst.msk [vmem:[#allocation2 + $0x6c] sm:$0xf] %vm1521_vm14, %v3633_v55  ;;  %v5842_v27 = vrot.slane %v5841_v56, 7  ;;  %v614_v53 = vadd.s32 224, %v4133_v50  ;;  %1534 = vst.msk [vmem:[#allocation2 + $0x38] sm:$0xf] %vm1521_vm14, %v3620_v49  ;;  %v3632_v36 = vpack.c.bf16 %v1187_v30, %v1187_v30 }
 0x136   : > { %v5843_v63 = vmov %v5838_v42  ;;  %v5844_v26 = vmov %v5830_v2  ;;  %v616_v39 = vadd.s32 240, %v4133_v50  ;;  %v804_v13 = vand.u32 15, %v612_v21 }
 0x137   : > { %v1069_v54 = vsel %vm1066_vm11, %v5842_v27, %v1063_v12  ;;  %1549 = vst.msk [vmem:[#allocation2 + $0x74] sm:$0xf] %vm1521_vm14, %v3635_v7  ;;  %v1072_v1 = vsel %vm1066_vm11, %v5844_v26, %v5843_v63  ;;  %v818_v9 = vand.u32 15, %v614_v53  ;;  %v5845_v32 = vmov %v5842_v27  ;;  %1546 = vst.msk [vmem:[#allocation2 + $0x68] sm:$0xf] %vm1521_vm14, %v3632_v36  ;;  %v5857_v63 = vld [vmem:[#allocation13_spill] sm:$0xff] }
 0x138   : > { %v3637_v25 = vpack.c.bf16 %v1069_v54, %v1069_v54  ;;  %v5846_v34 = vmov %v5836_v31  ;;  %v5847_v40 = vrot.slane %v4517_v28, 7  ;;  %v5848_v38 = vrot.slane %v4470_v3, 7 }
 0x139   : > { %v1070_v18 = vsel %vm1066_vm11, %v5846_v34, %v5845_v32  ;;  %v832_v4 = vand.u32 15, %v616_v39  ;;  %v3655_v59 = vpack.c.bf16 %v4487_v48, %v4487_v48  ;;  %v5850_v46 = vrot.slane %v4428_v23, 1 }
 0x13a   : > { %v1067_v51 = vsel %vm1066_vm11, %v5848_v38, %v5847_v40  ;;  %1551 = vst.msk [vmem:[#allocation2 + $0x7c] sm:$0xf] %vm1521_vm14, %v3637_v25  ;;  %v5849_v2 = vmov %v5848_v38  ;;  %v5851_v35 = vrot.slane %v4397_v58, 1  ;;  %vm1028_vm3 = vcmp.gt.s32.totalorder %v804_v13, 0 }
 0x13b   : > { %v3639_v19 = vpack.c.bf16 %v1067_v51, %v1067_v51  ;;  %v1068_v29 = vsel %vm1066_vm11, %v1063_v12, %v5849_v2  ;;  %vm1030_vm4 = vcmp.gt.s32.totalorder %v818_v9, 0  ;;  %v1367_v5 = vsel %vm4972_vm15, %v1279_v43, 0.0  ;;  %1680 = vrot.lane.b32.xlu1 %v3655_v59, %s4021_s11  ;;  %v5861_v9 = vld [vmem:[#allocation15_spill] sm:$0xff]  ;;  %v5862_v2 = vld [vmem:[#allocation16_spill] sm:$0xff] }
 0x13c   : > { %v1282_v55 = vsel %vm1259_vm1, %v5851_v35, %v5850_v46  ;;  %v1189_v8 = vsel %vm1028_vm3, %v1072_v1, 0.0  ;;  %v1191_v0 = vsel %vm1030_vm4, %v1070_v18, 0.0  ;;  %vm1032_vm11 = vcmp.gt.s32.totalorder %v832_v4, 0  ;;  %v5864_v46 = vld [vmem:[#allocation18_spill] sm:$0xff] }
 0x13d   : > { %1553 = vst.msk [vmem:[#allocation2 + $0x84] sm:$0xf] %vm1521_vm14, %v3639_v19  ;;  %v599_v23 = vadd.s32 104, %v4133_v50  ;;  %v3634_v58 = vpack.c.bf16 %v1189_v8, %v1189_v8  ;;  %v3636_v12 = vpack.c.bf16 %v1191_v0, %v1191_v0  ;;  %v1193_v31 = vsel %vm1032_vm11, %v1068_v29, 0.0 }
 0x13e   : > { %v3680_v42 = vpack.c.bf16 %v1282_v55, %v1282_v55  ;;  %v3638_v57 = vpack.c.bf16 %v1193_v31, %v1193_v31  ;;  %v3683_v14 = vpack.c.bf16 %v1367_v5, %v1367_v5  ;;  %v5853_v33 = vand.u32 15, %v5852_v52 }
 0x13f   : > { %1548 = vst.msk [vmem:[#allocation2 + $0x70] sm:$0xf] %vm1521_vm14, %v3634_v58  ;;  %1550 = vst.msk [vmem:[#allocation2 + $0x78] sm:$0xf] %vm1521_vm14, %v3636_v12  ;;  %v5854_v43 = vrot.slane %v4235_v45, 1  ;;  %v5855_v60 = vrot.slane %v4487_v48, 1  ;;  %v3652_v21 = vpack.c.bf16 %v5825_v22, %v5825_v22  ;;  %v3653_v27 = vpack.c.bf16 %v4504_v47, %v4504_v47 }
 0x140   : > { %1891 = vrot.lane.b32.xlu0 %v3680_v42, %s4022_s12  ;;  %1552 = vst.msk [vmem:[#allocation2 + $0x80] sm:$0xf] %vm1521_vm14, %v3638_v57  ;;  %1897 = vrot.lane.b32.xlu1 %v3683_v14, %s4022_s12  ;;  %vm1210_vm5 = vcmp.lt.s32.totalorder %v5853_v33, 15  ;;  %v713_v7 = vand.u32 15, %v599_v23  ;;  %v609_v30 = vadd.s32 184, %v4133_v50  ;;  %v5856_v48 = vld [vmem:[#allocation12_spill] sm:$0xff]  ;;  %v3664_v38 = vpack.c.bf16 %v5831_v6, %v5831_v6 }
 0x141   : > { %v1275_v49 = vsel %vm1259_vm1, %v5855_v60, %v5854_v43  ;;  %v3686_v53 = vpack.c.bf16 %v5856_v48, %v5856_v48  ;;  %v5858_v22 = vld [vmem:[#allocation14_spill] sm:$0xff]  ;;  %v5859_v25 = vrot.slane %v4360_v17, 1  ;;  %v5860_v39 = vrot.slane %v4320_v15, 1 }
 0x142   : > { %v1371_v54 = vsel %vm1210_vm5, %v1275_v49, 0.0  ;;  %vm1208_vm14 = vcmp.lt.s32.totalorder %v713_v7, 15  ;;  %v783_v45 = vand.u32 15, %v609_v30  ;;  %v3684_v47 = vpack.c.bf16 %v5858_v22, %v5858_v22 }
 0x143   : > { %v3687_v36 = vpack.c.bf16 %v1371_v54, %v1371_v54  ;;  %v1369_v26 = vsel %vm1208_vm14, %v5857_v63, 0.0  ;;  %v1268_v13 = vsel %vm1259_vm1, %v5860_v39, %v5859_v25  ;;  %v611_v34 = vadd.s32 200, %v4133_v50 }
 0x144   : > { %1674 = vrot.lane.b32.xlu0 %v3652_v21, %s4021_s11  ;;  %1676 = vrot.lane.b32.xlu1 %v3653_v27, %s4021_s11  ;;  %vm1218_vm6 = vcmp.lt.s32.totalorder %v783_v45, 15  ;;  %v3685_v1 = vpack.c.bf16 %v1369_v26, %v1369_v26  ;;  %v3694_v18 = vpack.c.bf16 %v1268_v13, %v1268_v13  ;;  %v613_v15 = vadd.s32 216, %v4133_v50 }
 0x145   : > { %v1379_v32 = vsel %vm1218_vm6, %v5861_v9, 0.0  ;;  %v797_v17 = vand.u32 15, %v611_v34  ;;  %v3665_v51 = vpack.c.bf16 %v5829_v20, %v5829_v20  ;;  %v3666_v19 = vpack.c.bf16 %v5837_v41, %v5837_v41  ;;  %v5863_v20 = vld [vmem:[#allocation17_spill] sm:$0xff] }
 0x146   : > { %v3695_v40 = vpack.c.bf16 %v1379_v32, %v1379_v32  ;;  %v811_v61 = vand.u32 15, %v613_v15  ;;  %v3667_v4 = vpack.c.bf16 %v5835_v11, %v5835_v11  ;;  %v3696_v6 = vpack.c.bf16 %v5863_v20, %v5863_v20  ;;  %v5865_v11 = vld [vmem:[#allocation19_spill] sm:$0xff] }
 0x147   : > { %vm1220_vm1 = vcmp.lt.s32.totalorder %v797_v17, 15  ;;  %v615_v41 = vadd.s32 232, %v4133_v50  ;;  %v3698_v55 = vpack.c.bf16 %v5865_v11, %v5865_v11  ;;  %vm1746_vm8 = vcmask 60448  }
 0x148   : > { %1903 = vrot.lane.b32.xlu0 %v3686_v53, %s4022_s12  ;;  %1905 = vrot.lane.b32.xlu1 %v3687_v36, %s4022_s12  ;;  %v1381_v29 = vsel %vm1220_vm1, %v5862_v2, 0.0  ;;  %vm1222_vm7 = vcmp.lt.s32.totalorder %v811_v61, 15  ;;  %v617_v23 = vadd.s32 248, %v4133_v50  ;;  %v3668_v58 = vpack.c.bf16 %v5841_v56, %v5841_v56 }
 0x149   : > { %v3697_v59 = vpack.c.bf16 %v1381_v29, %v1381_v29  ;;  %v1383_v35 = vsel %vm1222_vm7, %v5864_v46, 0.0  ;;  %v825_v0 = vand.u32 15, %v615_v41  ;;  %v3669_v31 = vpack.c.bf16 %v4632_v62, %v4632_v62 }
 0x14a   : > { %v3699_v5 = vpack.c.bf16 %v1383_v35, %v1383_v35  ;;  %v839_v57 = vand.u32 15, %v617_v23  ;;  %v3670_v50 = vpack.c.bf16 %v4470_v3, %v4470_v3  ;;  %v3671_v56 = vpack.c.bf16 %v4517_v28, %v4517_v28 }
 0x14b   : > { %vm1224_vm9 = vcmp.lt.s32.totalorder %v825_v0, 15  ;;  %v3700_v52 = vpack.c.bf16 %v4759_v37, %v4759_v37  ;;  %vm1971_vm12 = vcmask 93248   ;;  %vm3027_vm15 = vcmask 1041408  }
 0x14c   : > { %1899 = vrot.lane.b32.xlu0 %v3684_v47, %s4022_s12  ;;  %1901 = vrot.lane.b32.xlu1 %v3685_v1, %s4022_s12  ;;  %v1385_v62 = vsel %vm1224_vm9, %v4752_v44, 0.0  ;;  %vm1226_vm10 = vcmp.lt.s32.totalorder %v839_v57, 15  ;;  %v3702_v44 = vpack.c.bf16 %v4812_v24, %v4812_v24 }
 0x14d   : > { %v1655_v12 = vpop.permute.xlu1 %1654  ;;  %v3701_v43 = vpack.c.bf16 %v1385_v62, %v1385_v62  ;;  %v1387_v28 = vsel %vm1226_vm10, %v4806_v16, 0.0 }
 0x14e   : > { %v1687_v8 = vpop.permute.xlu0 %1686  ;;  %1749 = vst.msk [vmem:[#allocation2 + $0x10] sm:$0xf] %vm1746_vm8, %v1655_v12  ;;  %v3703_v7 = vpack.c.bf16 %v1387_v28, %v1387_v28 }
 0x14f   : > { %1765 = vst.msk [vmem:[#allocation2 + $0x50] sm:$0xf] %vm1746_vm8, %v1687_v8 }
 0x150   : > { %1919 = vrot.lane.b32.xlu0 %v3694_v18, %s4022_s12  ;;  %1921 = vrot.lane.b32.xlu1 %v3695_v40, %s4022_s12 }
 0x151   : > { %v1657_v14 = vpop.permute.xlu1 %1656 }
 0x152   : > { %v1651_v42 = vpop.permute.xlu0 %1650  ;;  %1750 = vst.msk [vmem:[#allocation2 + $0x14] sm:$0xf] %vm1746_vm8, %v1657_v14 }
 0x153   : > { %1747 = vst.msk [vmem:[#allocation2 + $0x8] sm:$0xf] %vm1746_vm8, %v1651_v42 }
 0x154   : > { %1698 = vrot.lane.b32.xlu0 %v3664_v38, %s4021_s11  ;;  %1700 = vrot.lane.b32.xlu1 %v3665_v51, %s4021_s11 }
 0x155   : > { %v1689_v33 = vpop.permute.xlu1 %1688 }
 0x156   : > { %v1683_v3 = vpop.permute.xlu0 %1682  ;;  %1766 = vst.msk [vmem:[#allocation2 + $0x54] sm:$0xf] %vm1746_vm8, %v1689_v33 }
 0x157   : > { %1763 = vst.msk [vmem:[#allocation2 + $0x48] sm:$0xf] %vm1746_vm8, %v1683_v3 }
 0x158   : > { %1702 = vrot.lane.b32.xlu0 %v3666_v19, %s4021_s11  ;;  %1704 = vrot.lane.b32.xlu1 %v3667_v4, %s4021_s11 }
 0x159   : > { %v1685_v60 = vpop.permute.xlu1 %1684 }
 0x15a   : > { %v1653_v49 = vpop.permute.xlu0 %1652  ;;  %1764 = vst.msk [vmem:[#allocation2 + $0x4c] sm:$0xf] %vm1746_vm8, %v1685_v60 }
 0x15b   : > { %1748 = vst.msk [vmem:[#allocation2 + $0xc] sm:$0xf] %vm1746_vm8, %v1653_v49 }
 0x15c   : > { %1923 = vrot.lane.b32.xlu0 %v3696_v6, %s4022_s12  ;;  %1925 = vrot.lane.b32.xlu1 %v3697_v59, %s4022_s12 }
 0x15d   : > { %v1878_v16 = vpop.permute.xlu1 %1877 }
 0x15e   : > { %v1880_v37 = vpop.permute.xlu0 %1879  ;;  %1973 = vst.msk [vmem:[#allocation2 + $0xc] sm:$0xf] %vm1971_vm12, %v1878_v16 }
 0x15f   : > { %1974 = vst.msk [vmem:[#allocation2 + $0x10] sm:$0xf] %vm1971_vm12, %v1880_v37 }
 0x160   : > { %1927 = vrot.lane.b32.xlu0 %v3698_v55, %s4022_s12  ;;  %1929 = vrot.lane.b32.xlu1 %v3699_v5, %s4022_s12 }
 0x161   : > { %v1910_v24 = vpop.permute.xlu1 %1909 }
 0x162   : > { %v1912_v30 = vpop.permute.xlu0 %1911  ;;  %1989 = vst.msk [vmem:[#allocation2 + $0x4c] sm:$0xf] %vm1971_vm12, %v1910_v24 }
 0x163   : > { %1990 = vst.msk [vmem:[#allocation2 + $0x50] sm:$0xf] %vm1971_vm12, %v1912_v30 }
 0x164   : > { %1706 = vrot.lane.b32.xlu0 %v3668_v58, %s4021_s11  ;;  %1708 = vrot.lane.b32.xlu1 %v3669_v31, %s4021_s11 }
 0x165   : > { %v1665_v27 = vpop.permute.xlu1 %1664 }
 0x166   : > { %v1663_v21 = vpop.permute.xlu0 %1662  ;;  %1754 = vst.msk [vmem:[#allocation2 + $0x24] sm:$0xf] %vm1746_vm8, %v1665_v27 }
 0x167   : > { %1753 = vst.msk [vmem:[#allocation2 + $0x20] sm:$0xf] %vm1746_vm8, %v1663_v21 }
 0x168   : > { %1710 = vrot.lane.b32.xlu0 %v3670_v50, %s4021_s11  ;;  %1712 = vrot.lane.b32.xlu1 %v3671_v56, %s4021_s11 }
 0x169   : > { %v1697_v45 = vpop.permute.xlu1 %1696 }
 0x16a   : > { %v1695_v54 = vpop.permute.xlu0 %1694  ;;  %1770 = vst.msk [vmem:[#allocation2 + $0x64] sm:$0xf] %vm1746_vm8, %v1697_v45 }
 0x16b   : > { %1769 = vst.msk [vmem:[#allocation2 + $0x60] sm:$0xf] %vm1746_vm8, %v1695_v54 }
 0x16c   : > { %1931 = vrot.lane.b32.xlu0 %v3700_v52, %s4022_s12  ;;  %1933 = vrot.lane.b32.xlu1 %v3701_v43, %s4022_s12 }
 0x16d   : > { %v1882_v53 = vpop.permute.xlu1 %1881 }
 0x16e   : > { %v1876_v48 = vpop.permute.xlu0 %1875  ;;  %1975 = vst.msk [vmem:[#allocation2 + $0x14] sm:$0xf] %vm1971_vm12, %v1882_v53 }
 0x16f   : > { %1972 = vst.msk [vmem:[#allocation2 + $0x8] sm:$0xf] %vm1971_vm12, %v1876_v48 }
 0x170   : > { %1935 = vrot.lane.b32.xlu0 %v3702_v44, %s4022_s12  ;;  %1937 = vrot.lane.b32.xlu1 %v3703_v7, %s4022_s12 }
 0x171   : > { %v1661_v63 = vpop.permute.xlu1 %1660 }
 0x172   : > { %v1908_v36 = vpop.permute.xlu0 %1907  ;;  %1752 = vst.msk [vmem:[#allocation2 + $0x1c] sm:$0xf] %vm1746_vm8, %v1661_v63 }
 0x173   : > { %1988 = vst.msk [vmem:[#allocation2 + $0x48] sm:$0xf] %vm1971_vm12, %v1908_v36 }
 0x175   : > { %v1914_v47 = vpop.permute.xlu1 %1913  ;;  %v3981_v1 = vld [vmem:[#allocation2 + $0x10] sm:$0xff]  }
 0x176   : > { %v1659_v26 = vpop.permute.xlu0 %1658  ;;  %v3980_v22 = vld [vmem:[#allocation2 + $0x8] sm:$0xff]   ;;  %1991 = vst.msk [vmem:[#allocation2 + $0x54] sm:$0xf] %vm1971_vm12, %v1914_v47  ;;  %v3997_v48 = vld [vmem:[#allocation2 + $0x10] sm:$0xff]  }
 0x177   : > { %1751 = vst.msk [vmem:[#allocation2 + $0x18] sm:$0xf] %vm1746_vm8, %v1659_v26  ;;  %3825 = vmatprep.mubr.msk.bf16.mxu1 %vm2128_vm13, %v3980_v22  ;;  %3860 = vmatmul.mubr.msk.bf16.vlgmr.msra.gmra.mxu0 %vm2128_vm13, %v3980_v22 }
 0x178   : > { %3826 = vmatmul.mubr.msk.bf16.vlgmr.msra.gmra.mxu1 %vm2128_vm13, %v3981_v1  ;;  %3863 = vmatprep.mubr.msk.bf16.mxu0 %vm2128_vm13, %v3981_v1  ;;  %v2970_v1 = vld [vmem:[%s5642_s3] sm:$0x3] }
 0x179   : > { %3892 = vmatpush3.bf16.msra.mxu1 %v5057_v10  ;;  %v1693_v39 = vpop.permute.xlu1 %1692  ;;  %3964 = vmatprep.subr.msk.bf16.mxu0 %vm3027_vm15, %v2970_v1 }
 0x17a   : > { %1768 = vst.msk [vmem:[#allocation2 + $0x5c] sm:$0xf] %vm1746_vm8, %v1693_v39  ;;  %v3989_v57 = vld [vmem:[#allocation2 + $0x48] sm:$0xff]  }
 0x17b   : > { %v1691_v25 = vpop.permute.xlu0 %1690  ;;  %v4004_v39 = vld [vmem:[#allocation2 + $0x48] sm:$0xff]  }
 0x17c   : > { %1767 = vst.msk [vmem:[#allocation2 + $0x58] sm:$0xf] %vm1746_vm8, %v1691_v25  ;;  %v3029_v25 = vsel %vm3027_vm15, %v2970_v1, 0  ;;  %v5397_v1 = vld [vmem:[%s5644_s5] ss:$0 sm:$0xff] }
 0x17d   : > { %v1886_v9 = vpop.permute.xlu1 %1885  ;;  %v3990_v52 = vld [vmem:[#allocation2 + $0x50] sm:$0xff]   ;;  %3926 = vmatpush3.bf16.msra.mxu0 %v3029_v25 }
 0x17e   : > { %1977 = vst.msk [vmem:[#allocation2 + $0x1c] sm:$0xf] %vm1971_vm12, %v1886_v9 }
 0x17f   : > { %v1888_v13 = vpop.permute.xlu0 %1887 }
 0x180   : > { %1978 = vst.msk [vmem:[#allocation2 + $0x20] sm:$0xf] %vm1971_vm12, %v1888_v13  ;;  %v4005_v13 = vld [vmem:[#allocation2 + $0x50] sm:$0xff]  }
 0x181   : > { %v1918_v34 = vpop.permute.xlu1 %1917 }
 0x182   : > { %1993 = vst.msk [vmem:[#allocation2 + $0x5c] sm:$0xf] %vm1971_vm12, %v1918_v34 }
 0x184   : > { %v1671_v32 = vpop.permute.xlu0 %1670 }
 0x185   : > { %1757 = vst.msk [vmem:[#allocation2 + $0x30] sm:$0xf] %vm1746_vm8, %v1671_v32 }
 0x194   : > { %v1884_v18 = vpop.permute.xlu0 %1883 }
 0x195   : > { %1976 = vst.msk [vmem:[#allocation2 + $0x18] sm:$0xf] %vm1971_vm12, %v1884_v18 }
 0x196   : > { %v1673_v40 = vpop.permute.xlu1 %1672 }
 0x197   : > { %1758 = vst.msk [vmem:[#allocation2 + $0x34] sm:$0xf] %vm1746_vm8, %v1673_v40 }
 0x198   : > { %v1916_v10 = vpop.permute.xlu0 %1915 }
 0x199   : > { %1992 = vst.msk [vmem:[#allocation2 + $0x58] sm:$0xf] %vm1971_vm12, %v1916_v10 }
 0x19a   : > { %v1890_v17 = vpop.permute.xlu1 %1889 }
 0x19b   : > { %1979 = vst.msk [vmem:[#allocation2 + $0x24] sm:$0xf] %vm1971_vm12, %v1890_v17  ;;  %v4012_v17 = vld [vmem:[#allocation2 + $0x88] sm:$0xff]  }
 0x19c   : > { %v1667_v15 = vpop.permute.xlu0 %1666  ;;  %v3982_v38 = vld [vmem:[#allocation2 + $0x18] sm:$0xff]  }
 0x19d   : > { %1755 = vst.msk [vmem:[#allocation2 + $0x28] sm:$0xf] %vm1746_vm8, %v1667_v15  ;;  %3829 = vmatprep.mubr.msk.bf16.mxu1 %vm2128_vm13, %v3982_v38  ;;  %3864 = vmatmul.mubr.msk.bf16.gmra.mxu0 %vm2128_vm13, %v3982_v38  ;;  %v3998_v53 = vld [vmem:[#allocation2 + $0x18] sm:$0xff]  }
 0x19e   : > { %v1669_v51 = vpop.permute.xlu1 %1668 }
 0x19f   : > { %1756 = vst.msk [vmem:[#allocation2 + $0x2c] sm:$0xf] %vm1746_vm8, %v1669_v51 }
 0x1a0   : > { %v1896_v61 = vpop.permute.xlu0 %1895  ;;  %v3991_v33 = vld [vmem:[#allocation2 + $0x58] sm:$0xff]  }
 0x1a1   : > { %1982 = vst.msk [vmem:[#allocation2 + $0x30] sm:$0xf] %vm1971_vm12, %v1896_v61  ;;  %v4006_v9 = vld [vmem:[#allocation2 + $0x58] sm:$0xff]  }
 0x1a2   : > { %v1894_v19 = vpop.permute.xlu1 %1893  ;;  %v3983_v4 = vld [vmem:[#allocation2 + $0x20] sm:$0xff]  }
 0x1a3   : > { %1981 = vst.msk [vmem:[#allocation2 + $0x2c] sm:$0xf] %vm1971_vm12, %v1894_v19  ;;  %3830 = vmatmul.mubr.msk.bf16.gmra.mxu1 %vm2128_vm13, %v3983_v4  ;;  %3867 = vmatprep.mubr.msk.bf16.mxu0 %vm2128_vm13, %v3983_v4  ;;  %v3999_v36 = vld [vmem:[#allocation2 + $0x20] sm:$0xff]  }
 0x1a4   : > { %v1679_v2 = vpop.permute.xlu0 %1678 }
 0x1a5   : > { %1761 = vst.msk [vmem:[#allocation2 + $0x40] sm:$0xf] %vm1746_vm8, %v1679_v2 }
 0x1ad   : > { %v1681_v29 = vpop.permute.xlu1 %1680 }
 0x1ae   : > { %1762 = vst.msk [vmem:[#allocation2 + $0x44] sm:$0xf] %vm1746_vm8, %v1681_v29 }
 0x1b2   : > { %v1892_v20 = vpop.permute.xlu0 %1891  ;;  %v1898_v6 = vpop.permute.xlu1 %1897 }
 0x1b3   : > { %1980 = vst.msk [vmem:[#allocation2 + $0x28] sm:$0xf] %vm1971_vm12, %v1892_v20  ;;  %1983 = vst.msk [vmem:[#allocation2 + $0x34] sm:$0xf] %vm1971_vm12, %v1898_v6 }
 0x1b6   : > { %v1675_v59 = vpop.permute.xlu0 %1674  ;;  %v1677_v46 = vpop.permute.xlu1 %1676 }
 0x1b7   : > { %1759 = vst.msk [vmem:[#allocation2 + $0x38] sm:$0xf] %vm1746_vm8, %v1675_v59  ;;  %1760 = vst.msk [vmem:[#allocation2 + $0x3c] sm:$0xf] %vm1746_vm8, %v1677_v46 }
 0x1ba   : > { %v1904_v35 = vpop.permute.xlu0 %1903  ;;  %v3985_v41 = vld [vmem:[#allocation2 + $0x28] sm:$0xff]   ;;  %v1906_v11 = vpop.permute.xlu1 %1905  ;;  %v3986_v55 = vld [vmem:[#allocation2 + $0x30] sm:$0xff]  }
 0x1bb   : > { %1986 = vst.msk [vmem:[#allocation2 + $0x40] sm:$0xf] %vm1971_vm12, %v1904_v35  ;;  %1987 = vst.msk [vmem:[#allocation2 + $0x44] sm:$0xf] %vm1971_vm12, %v1906_v11  ;;  %3833 = vmatprep.mubr.msk.bf16.mxu1 %vm2128_vm13, %v3985_v41  ;;  %3868 = vmatmul.mubr.msk.bf16.gmra.mxu0 %vm2128_vm13, %v3985_v41  ;;  %v4000_v63 = vld [vmem:[#allocation2 + $0x28] sm:$0xff]   ;;  %v4001_v26 = vld [vmem:[#allocation2 + $0x30] sm:$0xff]  }
 0x1bc   : > { %3834 = vmatmul.mubr.msk.bf16.gmra.mxu1 %vm2128_vm13, %v3986_v55  ;;  %3871 = vmatprep.mubr.msk.bf16.mxu0 %vm2128_vm13, %v3986_v55 }
 0x1be   : > { %v1900_v5 = vpop.permute.xlu0 %1899  ;;  %v1902_v8 = vpop.permute.xlu1 %1901 }
 0x1bf   : > { %1984 = vst.msk [vmem:[#allocation2 + $0x38] sm:$0xf] %vm1971_vm12, %v1900_v5  ;;  %1985 = vst.msk [vmem:[#allocation2 + $0x3c] sm:$0xf] %vm1971_vm12, %v1902_v8 }
 0x1c2   : > { %v1920_v0 = vpop.permute.xlu0 %1919  ;;  %v1922_v23 = vpop.permute.xlu1 %1921  ;;  %v3988_v42 = vld [vmem:[#allocation2 + $0x40] sm:$0xff]  }
 0x1c3   : > { %1994 = vst.msk [vmem:[#allocation2 + $0x60] sm:$0xf] %vm1971_vm12, %v1920_v0  ;;  %1995 = vst.msk [vmem:[#allocation2 + $0x64] sm:$0xf] %vm1971_vm12, %v1922_v23  ;;  %v4003_v47 = vld [vmem:[#allocation2 + $0x40] sm:$0xff]  }
 0x1c6   : > { %v1699_v58 = vpop.permute.xlu0 %1698  ;;  %v1701_v12 = vpop.permute.xlu1 %1700  ;;  %v3987_v31 = vld [vmem:[#allocation2 + $0x38] sm:$0xff]  }
 0x1c7   : > { %1771 = vst.msk [vmem:[#allocation2 + $0x68] sm:$0xf] %vm1746_vm8, %v1699_v58  ;;  %1772 = vst.msk [vmem:[#allocation2 + $0x6c] sm:$0xf] %vm1746_vm8, %v1701_v12  ;;  %3837 = vmatprep.mubr.msk.bf16.mxu1 %vm2128_vm13, %v3987_v31  ;;  %3872 = vmatmul.mubr.msk.bf16.gmra.mxu0 %vm2128_vm13, %v3987_v31  ;;  %v4002_v22 = vld [vmem:[#allocation2 + $0x38] sm:$0xff]  }
 0x1c8   : > { %3838 = vmatmul.mubr.msk.bf16.gmra.mxu1 %vm2128_vm13, %v3988_v42  ;;  %3875 = vmatprep.mubr.msk.bf16.mxu0 %vm2128_vm13, %v3988_v42 }
 0x1c9   : > { %3841 = vmatprep.mubr.msk.bf16.mxu1 %vm2128_vm13, %v3989_v57 }
 0x1ca   : > { %v1703_v50 = vpop.permute.xlu0 %1702  ;;  %v1705_v14 = vpop.permute.xlu1 %1704  ;;  %v3992_v60 = vld [vmem:[#allocation2 + $0x60] sm:$0xff]  }
 0x1cb   : > { %1773 = vst.msk [vmem:[#allocation2 + $0x70] sm:$0xf] %vm1746_vm8, %v1703_v50  ;;  %1774 = vst.msk [vmem:[#allocation2 + $0x74] sm:$0xf] %vm1746_vm8, %v1705_v14  ;;  %v4007_v32 = vld [vmem:[#allocation2 + $0x60] sm:$0xff]  }
 0x1ce   : > { %v1924_v56 = vpop.permute.xlu0 %1923  ;;  %v1926_v62 = vpop.permute.xlu1 %1925 }
 0x1cf   : > { %1996 = vst.msk [vmem:[#allocation2 + $0x68] sm:$0xf] %vm1971_vm12, %v1924_v56  ;;  %1997 = vst.msk [vmem:[#allocation2 + $0x6c] sm:$0xf] %vm1971_vm12, %v1926_v62  ;;  %3876 = vmatmul.mubr.msk.bf16.gmra.mxu0 %vm2128_vm13, %v3989_v57 }
 0x1d0   : > { %3842 = vmatmul.mubr.msk.bf16.gmra.mxu1 %vm2128_vm13, %v3990_v52  ;;  %3879 = vmatprep.mubr.msk.bf16.mxu0 %vm2128_vm13, %v3990_v52 }
 0x1d1   : > { %3845 = vmatprep.mubr.msk.bf16.mxu1 %vm2128_vm13, %v3991_v33 }
 0x1d2   : > { %v1928_v3 = vpop.permute.xlu0 %1927  ;;  %v1930_v43 = vpop.permute.xlu1 %1929 }
 0x1d3   : > { %1998 = vst.msk [vmem:[#allocation2 + $0x70] sm:$0xf] %vm1971_vm12, %v1928_v3  ;;  %1999 = vst.msk [vmem:[#allocation2 + $0x74] sm:$0xf] %vm1971_vm12, %v1930_v43 }
 0x1d6   : > { %v1707_v28 = vpop.permute.xlu0 %1706  ;;  %v1709_v44 = vpop.permute.xlu1 %1708  ;;  %v3993_v49 = vld [vmem:[#allocation2 + $0x68] sm:$0xff]  }
 0x1d7   : > { %1775 = vst.msk [vmem:[#allocation2 + $0x78] sm:$0xf] %vm1746_vm8, %v1707_v28  ;;  %1776 = vst.msk [vmem:[#allocation2 + $0x7c] sm:$0xf] %vm1746_vm8, %v1709_v44  ;;  %3880 = vmatmul.mubr.msk.bf16.gmra.mxu0 %vm2128_vm13, %v3991_v33  ;;  %v4008_v34 = vld [vmem:[#allocation2 + $0x68] sm:$0xff]  }
 0x1d8   : > { %3846 = vmatmul.mubr.msk.bf16.gmra.mxu1 %vm2128_vm13, %v3992_v60  ;;  %3883 = vmatprep.mubr.msk.bf16.mxu0 %vm2128_vm13, %v3992_v60 }
 0x1d9   : > { %3849 = vmatprep.mubr.msk.bf16.mxu1 %vm2128_vm13, %v3993_v49 }
 0x1da   : > { %v1711_v7 = vpop.permute.xlu0 %1710  ;;  %v1713_v37 = vpop.permute.xlu1 %1712  ;;  %v3994_v24 = vld [vmem:[#allocation2 + $0x70] sm:$0xff]  }
 0x1db   : > { %1777 = vst.msk [vmem:[#allocation2 + $0x80] sm:$0xf] %vm1746_vm8, %v1711_v7  ;;  %1778 = vst.msk [vmem:[#allocation2 + $0x84] sm:$0xf] %vm1746_vm8, %v1713_v37  ;;  %v4009_v18 = vld [vmem:[#allocation2 + $0x70] sm:$0xff]  }
 0x1de   : > { %v1932_v16 = vpop.permute.xlu0 %1931  ;;  %v1934_v30 = vpop.permute.xlu1 %1933 }
 0x1df   : > { %2000 = vst.msk [vmem:[#allocation2 + $0x78] sm:$0xf] %vm1971_vm12, %v1932_v16  ;;  %2001 = vst.msk [vmem:[#allocation2 + $0x7c] sm:$0xf] %vm1971_vm12, %v1934_v30  ;;  %3884 = vmatmul.mubr.msk.bf16.gmra.mxu0 %vm2128_vm13, %v3993_v49 }
 0x1e0   : > { %3850 = vmatmul.mubr.msk.bf16.gmra.mxu1 %vm2128_vm13, %v3994_v24  ;;  %3887 = vmatprep.mubr.msk.bf16.mxu0 %vm2128_vm13, %v3994_v24 }
 0x1e2   : > { %v1936_v21 = vpop.permute.xlu0 %1935  ;;  %v1938_v27 = vpop.permute.xlu1 %1937 }
 0x1e3   : > { %2002 = vst.msk [vmem:[#allocation2 + $0x80] sm:$0xf] %vm1971_vm12, %v1936_v21  ;;  %2003 = vst.msk [vmem:[#allocation2 + $0x84] sm:$0xf] %vm1971_vm12, %v1938_v27 }
 0x1e6   : > { %v3995_v54 = vld [vmem:[#allocation2 + $0x78] sm:$0xff]  }
 0x1e7   : > { %3853 = vmatprep.mubr.msk.bf16.mxu1 %vm2128_vm13, %v3995_v54  ;;  %3888 = vmatmul.mubr.msk.bf16.gmra.mxu0 %vm2128_vm13, %v3995_v54  ;;  %v4010_v40 = vld [vmem:[#allocation2 + $0x78] sm:$0xff]  }
 0x1ea   : > { %v3996_v45 = vld [vmem:[#allocation2 + $0x80] sm:$0xff]  }
 0x1eb   : > { %3854 = vmatmul.mubr.msk.bf16.gmra.mxu1 %vm2128_vm13, %v3996_v45  ;;  %v4011_v10 = vld [vmem:[#allocation2 + $0x80] sm:$0xff]  }
 0x1ec   : > { %3893 = vmatprep.mubr.msk.bf16.mxu1 %vm2128_vm13, %v3997_v48 }
 0x1f3   : > { %3894 = vmatmul.mubr.msk.bf16.vlgmr.msra.gmra.mxu1 %vm2128_vm13, %v3998_v53 }
 0x1f4   : > { %3897 = vmatprep.mubr.msk.bf16.mxu1 %vm2128_vm13, %v3999_v36 }
 0x1fb   : > { %3898 = vmatmul.mubr.msk.bf16.gmra.mxu1 %vm2128_vm13, %v4000_v63 }
 0x1fc   : > { %3901 = vmatprep.mubr.msk.bf16.mxu1 %vm2128_vm13, %v4001_v26 }
 0x203   : > { %3902 = vmatmul.mubr.msk.bf16.gmra.mxu1 %vm2128_vm13, %v4002_v22 }
 0x204   : > { %3905 = vmatprep.mubr.msk.bf16.mxu1 %vm2128_vm13, %v4003_v47 }
 0x20b   : > { %3906 = vmatmul.mubr.msk.bf16.gmra.mxu1 %vm2128_vm13, %v4004_v39 }
 0x20c   : > { %3909 = vmatprep.mubr.msk.bf16.mxu1 %vm2128_vm13, %v4005_v13 }
 0x213   : > { %3910 = vmatmul.mubr.msk.bf16.gmra.mxu1 %vm2128_vm13, %v4006_v9 }
 0x214   : > { %3913 = vmatprep.mubr.msk.bf16.mxu1 %vm2128_vm13, %v4007_v32 }
 0x21b   : > { %3914 = vmatmul.mubr.msk.bf16.gmra.mxu1 %vm2128_vm13, %v4008_v34 }
 0x21c   : > { %3917 = vmatprep.mubr.msk.bf16.mxu1 %vm2128_vm13, %v4009_v18 }
 0x223   : > { %3918 = vmatmul.mubr.msk.bf16.gmra.mxu1 %vm2128_vm13, %v4010_v40 }
 0x224   : > { %3921 = vmatprep.mubr.msk.bf16.mxu1 %vm2128_vm13, %v4011_v10 }
 0x22b   : > { %3922 = vmatmul.mubr.msk.bf16.gmra.mxu1 %vm2128_vm13, %v4012_v17  ;;  %vm2978_vm13 = vcmask 31744  }
 0x237   : > { %v3861_v29 = vpop.f32.mrf.mxu0 }
 0x238   : > { %v3827_v15 = vpop.f32.mrf.mxu1 }
 0x239   : > { %v2392_v59 = vpop.f32.mrf.mxu0  ;;  %v2401_v36 = vadd.f32 %v3861_v29, %v3827_v15 }
 0x23a   : > { %v2215_v38 = vpop.f32.mrf.mxu1 }
 0x23b   : > { %v3862_v35 = vpop.f32.mrf.mxu0  ;;  %v2393_v22 = vadd.f32 %v2392_v59, %v2215_v38 }
 0x23c   : > { %v3828_v51 = vpop.f32.mrf.mxu1 }
 0x23d   : > { %v2395_v11 = vpop.f32.mrf.mxu0  ;;  %v2404_v39 = vadd.f32 %v3862_v35, %v3828_v51 }
 0x23e   : > { %v2218_v61 = vpop.f32.mrf.mxu1 }
 0x23f   : > { %v2396_v34 = vadd.f32 %v2395_v11, %v2218_v61 }
 0x25d   : > { %v3865_v5 = vpop.f32.mrf.mxu0 }
 0x25f   : > { %v2408_v23 = vpop.f32.mrf.mxu0 }
 0x261   : > { %v3866_v31 = vpop.f32.mrf.mxu0 }
 0x263   : > { %v3831_v19 = vpop.f32.mrf.mxu1  ;;  %v2411_v50 = vpop.f32.mrf.mxu0 }
 0x264   : > { %v2417_v17 = vadd.f32 %v3865_v5, %v3831_v19 }
 0x265   : > { %v2231_v4 = vpop.f32.mrf.mxu1 }
 0x266   : > { %v2409_v59 = vadd.f32 %v2408_v23, %v2231_v4 }
 0x267   : > { %v5326_v2 = vpop.f32.mrf.mxu1 }
 0x268   : > { %v2420_v61 = vadd.f32 %v3866_v31, %v5326_v2 }
 0x269   : > { %v5328_v20 = vpop.f32.mrf.mxu1 }
 0x26a   : > { %v2412_v4 = vadd.f32 %v2411_v50, %v5328_v20 }
 0x27b   : > { %v3869_v56 = vpop.f32.mrf.mxu0 }
 0x27c   : > { %v5330_v6 = vpop.f32.mrf.mxu1 }
 0x27d   : > { %v5356_v33 = vpop.f32.mrf.mxu0 }
 0x27e   : > { %v5332_v46 = vpop.f32.mrf.mxu1 }
 0x27f   : > { %v5362_v28 = vpop.f32.mrf.mxu0 }
 0x280   : > { %v5334_v41 = vpop.f32.mrf.mxu1 }
 0x281   : > { %v5368_v49 = vpop.f32.mrf.mxu0 }
 0x282   : > { %v5336_v55 = vpop.f32.mrf.mxu1 }
 0x287   : > { %v5372_v37 = vpop.f32.mrf.mxu0 }
 0x288   : > { %v5338_v8 = vpop.f32.mrf.mxu1 }
 0x289   : > { %v5376_v30 = vpop.f32.mrf.mxu0 }
 0x28a   : > { %v5340_v0 = vpop.f32.mrf.mxu1 }
 0x28b   : > { %v5380_v21 = vpop.f32.mrf.mxu0 }
 0x28c   : > { %v5342_v58 = vpop.f32.mrf.mxu1 }
 0x28d   : > { %v5386_v45 = vpop.f32.mrf.mxu0 }
 0x28e   : > { %v5344_v12 = vpop.f32.mrf.mxu1 }
 0x28f   : > { %v5392_v63 = vpop.f32.mrf.mxu0 }
 0x290   : > { %v5346_v42 = vpop.f32.mrf.mxu1 }
 0x291   : > { %v5399_v9 = vpop.f32.mrf.mxu0 }
 0x292   : > { %v5348_v57 = vpop.f32.mrf.mxu1 }
 0x294   : > { %v5350_v14 = vpop.f32.mrf.mxu1 }
 0x296   : > { %v5352_v62 = vpop.f32.mrf.mxu1 }
 0x298   : > { %v5354_v52 = vpop.f32.mrf.mxu1 }
 0x29a   : > { %v5358_v3 = vpop.f32.mrf.mxu1 }
 0x29c   : > { %v5360_v43 = vpop.f32.mrf.mxu1 }
 0x29e   : > { %v5364_v44 = vpop.f32.mrf.mxu1 }
 0x2a0   : > { %v5366_v60 = vpop.f32.mrf.mxu1 }
 0x2a2   : > { %v5370_v7 = vpop.f32.mrf.mxu1 }
 0x2a4   : > { %v5374_v16 = vpop.f32.mrf.mxu1 }
 0x2a6   : > { %v5378_v24 = vpop.f32.mrf.mxu1 }
 0x2ab   : > { %v5382_v27 = vpop.f32.mrf.mxu1 }
 0x2ad   : > { %v5384_v54 = vpop.f32.mrf.mxu1 }
 0x2af   : > { %v5388_v48 = vpop.f32.mrf.mxu1 }
 0x2b1   : > { %v5390_v53 = vpop.f32.mrf.mxu1 }
 0x2b3   : > { %v3895_v26 = vpop.f32.mrf.mxu1 }
 0x2b4   : > { %v2853_v47 = vadd.f32 %v3895_v26, %v2401_v36  ;;  %v5404_v36 = vpop.f32.mrf.mxu0 }
 0x2b5   : > { %v2724_v25 = vpop.f32.mrf.mxu1 }
 0x2b6   : > { %v2851_v13 = vadd.f32 %v2724_v25, %v2393_v22  ;;  %v2892_v18 = vadd.f32 %v5397_v1, %v2853_v47 }
 0x2b7   : > { %v3896_v32 = vpop.f32.mrf.mxu1 }
 0x2b8   : > { %v2854_v40 = vadd.f32 %v3896_v32, %v2404_v39  ;;  %v2890_v15 = vadd.f32 %v5397_v1, %v2851_v13  ;;  %v2924_v51 = vmax.f32 %v2892_v18, 0.0  ;;  %v5408_v13 = vpop.f32.mrf.mxu0 }
 0x2b9   : > { %v2727_v10 = vpop.f32.mrf.mxu1 }
 0x2ba   : > { %v2893_v38 = vadd.f32 %v5397_v1, %v2854_v40  ;;  %v2852_v29 = vadd.f32 %v2727_v10, %v2396_v34  ;;  %v2922_v47 = vmax.f32 %v2890_v15, 0.0  ;;  %v2433_v10 = vadd.f32 %v3869_v56, %v5330_v6 }
 0x2bb   : > { %v3899_v26 = vpop.f32.mrf.mxu1  ;;  %v2425_v15 = vadd.f32 %v5356_v33, %v5332_v46  ;;  %v2436_v56 = vadd.f32 %v5362_v28, %v5334_v41  ;;  %v2428_v33 = vadd.f32 %v5368_v49, %v5336_v55 }
 0x2bc   : > { %v2925_v35 = vmax.f32 %v2893_v38, 0.0  ;;  %v2891_v22 = vadd.f32 %v5397_v1, %v2852_v29  ;;  %v2857_v25 = vadd.f32 %v3899_v26, %v2417_v17  ;;  %v5418_v38 = vpop.f32.mrf.mxu0 }
 0x2bd   : > { %v2740_v11 = vpop.f32.mrf.mxu1 }
 0x2be   : > { %v2955_v39 = vpack.c.bf16 %v2925_v35, %v2924_v51  ;;  %v2923_v19 = vmax.f32 %v2891_v22, 0.0  ;;  %v2855_v5 = vadd.f32 %v2740_v11, %v2409_v59  ;;  %v2896_v34 = vadd.f32 %v5397_v1, %v2857_v25 }
 0x2bf   : > { %v3900_v32 = vpop.f32.mrf.mxu1 }
 0x2c0   : > { %v2954_v23 = vpack.c.bf16 %v2923_v19, %v2922_v47  ;;  %v2858_v18 = vadd.f32 %v3900_v32, %v2420_v61  ;;  %v2894_v2 = vadd.f32 %v5397_v1, %v2855_v5  ;;  %v2928_v50 = vmax.f32 %v2896_v34, 0.0  ;;  %v5424_v61 = vpop.f32.mrf.mxu0 }
 0x2c1   : > { %v2743_v40 = vpop.f32.mrf.mxu1  ;;  %v2449_v5 = vadd.f32 %v5372_v37, %v5338_v8  ;;  %v2452_v8 = vadd.f32 %v5380_v21, %v5342_v58 }
 0x2c2   : > { %v2897_v31 = vadd.f32 %v5397_v1, %v2858_v18  ;;  %v2856_v17 = vadd.f32 %v2743_v40, %v2412_v4  ;;  %3927 = vmatprep.mubr.msk.bf16.mxu0 %vm2978_vm13, %v2954_v23  ;;  %v2926_v51 = vmax.f32 %v2894_v2, 0.0  ;;  %v2441_v4 = vadd.f32 %v5376_v30, %v5340_v0  ;;  %v3882_v23 = vpop.f32.mrf.mxu0 }
 0x2c3   : > { %v3903_v20 = vpop.f32.mrf.mxu1  ;;  %3928 = vmatmul.mubr.msk.bf16.vlgmr.msra.gmra.mxu0 %vm2978_vm13, %v2955_v39  ;;  %v2444_v0 = vadd.f32 %v5386_v45, %v5344_v12 }
 0x2c4   : > { %v2929_v29 = vmax.f32 %v2897_v31, 0.0  ;;  %v2895_v59 = vadd.f32 %v5397_v1, %v2856_v17  ;;  %v2861_v6 = vadd.f32 %v3903_v20, %v2433_v10 }
 0x2c5   : > { %v2756_v26 = vpop.f32.mrf.mxu1 }
 0x2c6   : > { %v2957_v35 = vpack.c.bf16 %v2929_v29, %v2928_v50  ;;  %v2927_v22 = vmax.f32 %v2895_v59, 0.0  ;;  %v2859_v25 = vadd.f32 %v2756_v26, %v2425_v15  ;;  %v2900_v47 = vadd.f32 %v5397_v1, %v2861_v6  ;;  %v2475_v15 = vpop.f32.mrf.mxu0 }
 0x2c7   : > { %v3904_v46 = vpop.f32.mrf.mxu1  ;;  %v2465_v6 = vadd.f32 %v5392_v63, %v5346_v42  ;;  %v2457_v26 = vadd.f32 %v5399_v9, %v5348_v57  ;;  %v2468_v42 = vadd.f32 %v5404_v36, %v5350_v14  ;;  %v2460_v57 = vadd.f32 %v5408_v13, %v5352_v62 }
 0x2c8   : > { %v2956_v11 = vpack.c.bf16 %v2927_v22, %v2926_v51  ;;  %v2862_v39 = vadd.f32 %v3904_v46, %v2436_v56  ;;  %v2898_v41 = vadd.f32 %v5397_v1, %v2859_v25  ;;  %v2932_v49 = vmax.f32 %v2900_v47, 0.0  ;;  %v3885_v51 = vpop.f32.mrf.mxu0 }
 0x2c9   : > { %v2759_v19 = vpop.f32.mrf.mxu1 }
 0x2ca   : > { %v2901_v28 = vadd.f32 %v5397_v1, %v2862_v39  ;;  %v2860_v32 = vadd.f32 %v2759_v19, %v2428_v33  ;;  %3931 = vmatprep.mubr.msk.bf16.mxu0 %vm2978_vm13, %v2956_v11  ;;  %v2930_v10 = vmax.f32 %v2898_v41, 0.0  ;;  %v2488_v39 = vpop.f32.mrf.mxu0 }
 0x2cb   : > { %v3907_v55 = vpop.f32.mrf.mxu1  ;;  %3932 = vmatmul.mubr.msk.bf16.gmra.mxu0 %vm2978_vm13, %v2957_v35 }
 0x2cc   : > { %v2933_v34 = vmax.f32 %v2901_v28, 0.0  ;;  %v2899_v18 = vadd.f32 %v5397_v1, %v2860_v32  ;;  %v2865_v40 = vadd.f32 %v3907_v55, %v2449_v5  ;;  %v2481_v32 = vadd.f32 %v5418_v38, %v5354_v52 }
 0x2cd   : > { %v2772_v37 = vpop.f32.mrf.mxu1  ;;  %v2473_v55 = vadd.f32 %v5424_v61, %v5358_v3  ;;  %v2484_v52 = vadd.f32 %v3882_v23, %v5360_v43  ;;  %v2476_v3 = vadd.f32 %v2475_v15, %v5364_v44 }
 0x2ce   : > { %v2959_v2 = vpack.c.bf16 %v2933_v34, %v2932_v49  ;;  %v2931_v31 = vmax.f32 %v2899_v18, 0.0  ;;  %v2863_v17 = vadd.f32 %v2772_v37, %v2441_v4  ;;  %v2904_v50 = vadd.f32 %v5397_v1, %v2865_v40  ;;  %v3886_v49 = vpop.f32.mrf.mxu0 }
 0x2cf   : > { %v3908_v20 = vpop.f32.mrf.mxu1 }
 0x2d0   : > { %v2958_v30 = vpack.c.bf16 %v2931_v31, %v2930_v10  ;;  %v2866_v29 = vadd.f32 %v3908_v20, %v2452_v8  ;;  %v2902_v58 = vadd.f32 %v5397_v1, %v2863_v17  ;;  %v2936_v45 = vmax.f32 %v2904_v50, 0.0  ;;  %v2491_v31 = vpop.f32.mrf.mxu0 }
 0x2d1   : > { %v2775_v59 = vpop.f32.mrf.mxu1  ;;  %v2497_v50 = vadd.f32 %v3885_v51, %v5366_v60  ;;  %v2500_v60 = vadd.f32 %v3886_v49, %v5374_v16 }
 0x2d2   : > { %v2905_v21 = vadd.f32 %v5397_v1, %v2866_v29  ;;  %v2864_v56 = vadd.f32 %v2775_v59, %v2444_v0  ;;  %3935 = vmatprep.mubr.msk.bf16.mxu0 %vm2978_vm13, %v2958_v30  ;;  %v2934_v46 = vmax.f32 %v2902_v58, 0.0  ;;  %v2489_v59 = vadd.f32 %v2488_v39, %v5370_v7 }
 0x2d3   : > { %v3911_v12 = vpop.f32.mrf.mxu1  ;;  %3936 = vmatmul.mubr.msk.bf16.gmra.mxu0 %vm2978_vm13, %v2959_v2  ;;  %v2492_v7 = vadd.f32 %v2491_v31, %v5378_v24 }
 0x2d4   : > { %v2937_v35 = vmax.f32 %v2905_v21, 0.0  ;;  %v2903_v22 = vadd.f32 %v5397_v1, %v2864_v56  ;;  %v2869_v25 = vadd.f32 %v3911_v12, %v2465_v6  ;;  %v3889_v6 = vpop.f32.mrf.mxu0 }
 0x2d5   : > { %v2788_v63 = vpop.f32.mrf.mxu1 }
 0x2d6   : > { %v2961_v33 = vpack.c.bf16 %v2937_v35, %v2936_v45  ;;  %v2935_v11 = vmax.f32 %v2903_v22, 0.0  ;;  %v2867_v47 = vadd.f32 %v2788_v63, %v2457_v26  ;;  %v2908_v5 = vadd.f32 %v5397_v1, %v2869_v25  ;;  %v2504_v22 = vpop.f32.mrf.mxu0 }
 0x2d7   : > { %v3912_v19 = vpop.f32.mrf.mxu1 }
 0x2d8   : > { %v2960_v9 = vpack.c.bf16 %v2935_v11, %v2934_v46  ;;  %v2870_v41 = vadd.f32 %v3912_v19, %v2468_v42  ;;  %v2906_v14 = vadd.f32 %v5397_v1, %v2867_v47  ;;  %v2940_v13 = vmax.f32 %v2908_v5, 0.0  ;;  %v3890_v19 = vpop.f32.mrf.mxu0 }
 0x2d9   : > { %v2791_v28 = vpop.f32.mrf.mxu1  ;;  %v2513_v11 = vadd.f32 %v3889_v6, %v5382_v27  ;;  %v2516_v27 = vadd.f32 %v3890_v19, %v5388_v48  ;;  %v3197_v19 = vld [vmem:[%s4083_s8 + $0x28] sm:$0xff] }
 0x2da   : > { %v2909_v36 = vadd.f32 %v5397_v1, %v2870_v41  ;;  %v2868_v4 = vadd.f32 %v2791_v28, %v2460_v57  ;;  %3939 = vmatprep.mubr.msk.bf16.mxu0 %vm2978_vm13, %v2960_v9  ;;  %v2938_v8 = vmax.f32 %v2906_v14, 0.0  ;;  %v2505_v57 = vadd.f32 %v2504_v22, %v5384_v54  ;;  %v2507_v49 = vpop.f32.mrf.mxu0 }
 0x2db   : > { %v3915_v62 = vpop.f32.mrf.mxu1  ;;  %3940 = vmatmul.mubr.msk.bf16.gmra.mxu0 %vm2978_vm13, %v2961_v33 }
 0x2dc   : > { %v2941_v34 = vmax.f32 %v2909_v36, 0.0  ;;  %v2907_v18 = vadd.f32 %v5397_v1, %v2868_v4  ;;  %v2873_v40 = vadd.f32 %v3915_v62, %v2481_v32 }
 0x2dd   : > { %v2804_v38 = vpop.f32.mrf.mxu1 }
 0x2de   : > { %v2963_v37 = vpack.c.bf16 %v2941_v34, %v2940_v13  ;;  %v2939_v10 = vmax.f32 %v2907_v18, 0.0  ;;  %v2871_v2 = vadd.f32 %v2804_v38, %v2473_v55  ;;  %v2912_v20 = vadd.f32 %v5397_v1, %v2873_v40 }
 0x2df   : > { %v3916_v17 = vpop.f32.mrf.mxu1  ;;  %v2508_v13 = vadd.f32 %v2507_v49, %v5390_v53 }
 0x2e0   : > { %v2962_v61 = vpack.c.bf16 %v2939_v10, %v2938_v8  ;;  %v2874_v0 = vadd.f32 %v3916_v17, %v2484_v52  ;;  %v2910_v29 = vadd.f32 %v5397_v1, %v2871_v2  ;;  %v2944_v44 = vmax.f32 %v2912_v20, 0.0  ;;  %v3194_v20 = vld [vmem:[%s4083_s8 + $0x10] sm:$0xff] }
 0x2e1   : > { %v2807_v30 = vpop.f32.mrf.mxu1 }
 0x2e2   : > { %v2913_v43 = vadd.f32 %v5397_v1, %v2874_v0  ;;  %v2872_v23 = vadd.f32 %v2807_v30, %v2476_v3  ;;  %3943 = vmatprep.mubr.msk.bf16.mxu0 %vm2978_vm13, %v2962_v61  ;;  %v2942_v51 = vmax.f32 %v2910_v29, 0.0  ;;  %v5499_v3 = vld [vmem:[%s5645_s6] ss:$0 sm:$0xff] }
 0x2e3   : > { %v3919_v58 = vpop.f32.mrf.mxu1  ;;  %3944 = vmatmul.mubr.msk.bf16.gmra.mxu0 %vm2978_vm13, %v2963_v37  ;;  %v3192_v30 = vld [vmem:[%s4083_s8] sm:$0xff] }
 0x2e4   : > { %v2945_v15 = vmax.f32 %v2913_v43, 0.0  ;;  %v2911_v21 = vadd.f32 %v5397_v1, %v2872_v23  ;;  %v2877_v56 = vadd.f32 %v3919_v58, %v2497_v50  ;;  %v3195_v23 = vld [vmem:[%s4083_s8 + $0x18] sm:$0xff] }
 0x2e5   : > { %v2820_v26 = vpop.f32.mrf.mxu1 }
 0x2e6   : > { %v2965_v12 = vpack.c.bf16 %v2945_v15, %v2944_v44  ;;  %v2943_v45 = vmax.f32 %v2911_v21, 0.0  ;;  %v2875_v35 = vadd.f32 %v2820_v26, %v2489_v59  ;;  %v2916_v63 = vadd.f32 %v5397_v1, %v2877_v56  ;;  %v3193_v15 = vld [vmem:[%s4083_s8 + $0x8] sm:$0xff] }
 0x2e7   : > { %v3920_v25 = vpop.f32.mrf.mxu1 }
 0x2e8   : > { %v2964_v42 = vpack.c.bf16 %v2943_v45, %v2942_v51  ;;  %v2878_v46 = vadd.f32 %v3920_v25, %v2500_v60  ;;  %v2914_v47 = vadd.f32 %v5397_v1, %v2875_v35  ;;  %v2948_v24 = vmax.f32 %v2916_v63, 0.0  ;;  %v3198_v51 = vld [vmem:[%s4083_s8 + $0x30] sm:$0xff]  ;;  %v3196_v25 = vld [vmem:[%s4083_s8 + $0x20] sm:$0xff] }
 0x2e9   : > { %v2823_v33 = vpop.f32.mrf.mxu1 }
 0x2ea   : > { %v2917_v16 = vadd.f32 %v5397_v1, %v2878_v46  ;;  %v2876_v39 = vadd.f32 %v2823_v33, %v2492_v7  ;;  %3947 = vmatprep.mubr.msk.bf16.mxu0 %vm2978_vm13, %v2964_v42  ;;  %v2946_v14 = vmax.f32 %v2914_v47, 0.0  ;;  %v3199_v33 = vld [vmem:[%s4083_s8 + $0x38] sm:$0xff] }
 0x2eb   : > { %v3923_v9 = vpop.f32.mrf.mxu1  ;;  %3948 = vmatmul.mubr.msk.bf16.gmra.mxu0 %vm2978_vm13, %v2965_v12 }
 0x2ec   : > { %v2949_v5 = vmax.f32 %v2917_v16, 0.0  ;;  %v2915_v41 = vadd.f32 %v5397_v1, %v2876_v39  ;;  %v2881_v28 = vadd.f32 %v3923_v9, %v2513_v11 }
 0x2ed   : > { %v2836_v32 = vpop.f32.mrf.mxu1 }
 0x2ee   : > { %v2967_v36 = vpack.c.bf16 %v2949_v5, %v2948_v24  ;;  %v2947_v4 = vmax.f32 %v2915_v41, 0.0  ;;  %v2879_v55 = vadd.f32 %v2836_v32, %v2505_v57  ;;  %v2920_v34 = vadd.f32 %v5397_v1, %v2881_v28  ;;  %v3202_v41 = vld [vmem:[%s4083_s8 + $0x50] sm:$0xff] }
 0x2ef   : > { %v3924_v62 = vpop.f32.mrf.mxu1 }
 0x2f0   : > { %v2966_v54 = vpack.c.bf16 %v2947_v4, %v2946_v14  ;;  %v2882_v18 = vadd.f32 %v3924_v62, %v2516_v27  ;;  %v2918_v52 = vadd.f32 %v5397_v1, %v2879_v55  ;;  %v2952_v8 = vmax.f32 %v2920_v34, 0.0 }
 0x2f1   : > { %v2839_v40 = vpop.f32.mrf.mxu1 }
 0x2f2   : > { %v2921_v38 = vadd.f32 %v5397_v1, %v2882_v18  ;;  %v2880_v48 = vadd.f32 %v2839_v40, %v2508_v13  ;;  %3951 = vmatprep.mubr.msk.bf16.mxu0 %vm2978_vm13, %v2966_v54  ;;  %v2950_v10 = vmax.f32 %v2918_v52, 0.0  ;;  %v3203_v13 = vld [vmem:[%s4083_s8 + $0x58] sm:$0xff]  ;;  %v3201_v52 = vld [vmem:[%s4083_s8 + $0x48] sm:$0xff] }
 0x2f3   : > { %3952 = vmatmul.mubr.msk.bf16.gmra.mxu0 %vm2978_vm13, %v2967_v36  ;;  %v3200_v36 = vld [vmem:[%s4083_s8 + $0x40] sm:$0xff] }
 0x2f4   : > { %v2953_v37 = vmax.f32 %v2921_v38, 0.0  ;;  %v2919_v53 = vadd.f32 %v5397_v1, %v2880_v48 }
 0x2f6   : > { %v2969_v2 = vpack.c.bf16 %v2953_v37, %v2952_v8  ;;  %v2951_v31 = vmax.f32 %v2919_v53, 0.0  ;;  %v3206_v53 = vld [vmem:[%s4083_s8 + $0x70] sm:$0xff] }
 0x2f8   : > { %v2968_v17 = vpack.c.bf16 %v2951_v31, %v2950_v10 }
 0x2fa   : > { %3955 = vmatprep.mubr.msk.bf16.mxu0 %vm2978_vm13, %v2968_v17 }
 0x2fb   : > { %3956 = vmatmul.mubr.msk.bf16.gmra.mxu0 %vm2978_vm13, %v2969_v2 }
 0x383   : > { %v3929_v61 = vpop.f32.mrf.mxu0 }
 0x384   : > { %v3074_v0 = vadd.f32 %v3929_v61, %v5499_v3  ;;  %v3204_v61 = vld [vmem:[%s4083_s8 + $0x60] sm:$0xff] }
 0x385   : > { %v3065_v1 = vpop.f32.mrf.mxu0 }
 0x386   : > { %v3226_v50 = vadd.f32 %v3194_v20, %v3074_v0  ;;  %v3066_v29 = vadd.f32 %v5499_v3, %v3065_v1 }
 0x387   : > { %v3930_v43 = vpop.f32.mrf.mxu0 }
 0x388   : > { %v3258_v59 = vmax.f32 %v3226_v50, 0.0  ;;  %v3224_v6 = vadd.f32 %v3192_v30, %v3066_v29  ;;  %v3077_v58 = vadd.f32 %v3930_v43, %v5499_v3  ;;  %v3207_v50 = vld [vmem:[%s4083_s8 + $0x78] sm:$0xff] }
 0x389   : > { %v3068_v44 = vpop.f32.mrf.mxu0 }
 0x38a   : > { %3290 = vst.msk [vmem:[%s5510_s30 + $0x10] sm:$0xff] %vm343_vm0, %v3258_v59  ;;  %v3256_v21 = vmax.f32 %v3224_v6, 0.0  ;;  %v3227_v56 = vadd.f32 %v3195_v23, %v3077_v58  ;;  %v3069_v60 = vadd.f32 %v5499_v3, %v3068_v44  ;;  %v3205_v6 = vld [vmem:[%s4083_s8 + $0x68] sm:$0xff] }
 0x38b   : > { %v3933_v26 = vpop.f32.mrf.mxu0 }
 0x38c   : > { %3288 = vst.msk [vmem:[%s5510_s30] sm:$0xff] %vm343_vm0, %v3256_v21  ;;  %v3259_v12 = vmax.f32 %v3227_v56, 0.0  ;;  %v3225_v45 = vadd.f32 %v3193_v15, %v3069_v60  ;;  %v3090_v35 = vadd.f32 %v3933_v26, %v5499_v3  ;;  %v3210_v56 = vld [vmem:[%s4083_s8 + $0x90] sm:$0xff] }
 0x38d   : > { %v3081_v22 = vpop.f32.mrf.mxu0 }
 0x38e   : > { %3291 = vst.msk [vmem:[%s5510_s30 + $0x18] sm:$0xff] %vm343_vm0, %v3259_v12  ;;  %v3257_v7 = vmax.f32 %v3225_v45, 0.0  ;;  %v3230_v42 = vadd.f32 %v3198_v51, %v3090_v35  ;;  %v3082_v63 = vadd.f32 %v5499_v3, %v3081_v22  ;;  %v3208_v45 = vld [vmem:[%s4083_s8 + $0x80] sm:$0xff] }
 0x38f   : > { %v3934_v46 = vpop.f32.mrf.mxu0 }
 0x390   : > { %3289 = vst.msk [vmem:[%s5510_s30 + $0x8] sm:$0xff] %vm343_vm0, %v3257_v7  ;;  %v3262_v11 = vmax.f32 %v3230_v42, 0.0  ;;  %v3228_v47 = vadd.f32 %v3196_v25, %v3082_v63  ;;  %v3093_v16 = vadd.f32 %v3934_v46, %v5499_v3  ;;  %v3211_v42 = vld [vmem:[%s4083_s8 + $0x98] sm:$0xff] }
 0x391   : > { %v3084_v39 = vpop.f32.mrf.mxu0 }
 0x392   : > { %3294 = vst.msk [vmem:[%s5510_s30 + $0x30] sm:$0xff] %vm343_vm0, %v3262_v11  ;;  %v3260_v57 = vmax.f32 %v3228_v47, 0.0  ;;  %v3231_v9 = vadd.f32 %v3199_v33, %v3093_v16  ;;  %v3085_v24 = vadd.f32 %v5499_v3, %v3084_v39  ;;  %v3209_v47 = vld [vmem:[%s4083_s8 + $0x88] sm:$0xff] }
 0x393   : > { %v3937_v5 = vpop.f32.mrf.mxu0 }
 0x394   : > { %3292 = vst.msk [vmem:[%s5510_s30 + $0x20] sm:$0xff] %vm343_vm0, %v3260_v57  ;;  %v3263_v28 = vmax.f32 %v3231_v9, 0.0  ;;  %v3229_v27 = vadd.f32 %v3197_v19, %v3085_v24  ;;  %v3106_v32 = vadd.f32 %v3937_v5, %v5499_v3  ;;  %v3214_v9 = vld [vmem:[%s4083_s8 + $0xb0] sm:$0xff] }
 0x395   : > { %v3097_v14 = vpop.f32.mrf.mxu0 }
 0x396   : > { %3295 = vst.msk [vmem:[%s5510_s30 + $0x38] sm:$0xff] %vm343_vm0, %v3263_v28  ;;  %v3261_v4 = vmax.f32 %v3229_v27, 0.0  ;;  %v3234_v55 = vadd.f32 %v3202_v41, %v3106_v32  ;;  %v3098_v49 = vadd.f32 %v5499_v3, %v3097_v14  ;;  %v3212_v27 = vld [vmem:[%s4083_s8 + $0xa0] sm:$0xff] }
 0x397   : > { %v3938_v62 = vpop.f32.mrf.mxu0 }
 0x398   : > { %3293 = vst.msk [vmem:[%s5510_s30 + $0x28] sm:$0xff] %vm343_vm0, %v3261_v4  ;;  %v3266_v54 = vmax.f32 %v3234_v55, 0.0  ;;  %v3232_v34 = vadd.f32 %v3200_v36, %v3098_v49  ;;  %v3109_v18 = vadd.f32 %v3938_v62, %v5499_v3  ;;  %v3215_v55 = vld [vmem:[%s4083_s8 + $0xb8] sm:$0xff] }
 0x399   : > { %v3100_v40 = vpop.f32.mrf.mxu0 }
 0x39a   : > { %3298 = vst.msk [vmem:[%s5510_s30 + $0x50] sm:$0xff] %vm343_vm0, %v3266_v54  ;;  %v3264_v38 = vmax.f32 %v3232_v34, 0.0  ;;  %v3235_v48 = vadd.f32 %v3203_v13, %v3109_v18  ;;  %v3101_v8 = vadd.f32 %v5499_v3, %v3100_v40  ;;  %v3213_v34 = vld [vmem:[%s4083_s8 + $0xa8] sm:$0xff] }
 0x39b   : > { %v3941_v37 = vpop.f32.mrf.mxu0 }
 0x39c   : > { %3296 = vst.msk [vmem:[%s5510_s30 + $0x40] sm:$0xff] %vm343_vm0, %v3264_v38  ;;  %v3267_v10 = vmax.f32 %v3235_v48, 0.0  ;;  %v3233_v2 = vadd.f32 %v3201_v52, %v3101_v8  ;;  %v3122_v31 = vadd.f32 %v3941_v37, %v5499_v3  ;;  %v3218_v48 = vld [vmem:[%s4083_s8 + $0xd0] sm:$0xff] }
 0x39d   : > { %v3113_v17 = vpop.f32.mrf.mxu0 }
 0x39e   : > { %3299 = vst.msk [vmem:[%s5510_s30 + $0x58] sm:$0xff] %vm343_vm0, %v3267_v10  ;;  %v3265_v20 = vmax.f32 %v3233_v2, 0.0  ;;  %v3238_v0 = vadd.f32 %v3206_v53, %v3122_v31  ;;  %v3114_v1 = vadd.f32 %v5499_v3, %v3113_v17  ;;  %v3216_v2 = vld [vmem:[%s4083_s8 + $0xc0] sm:$0xff] }
 0x39f   : > { %v3942_v30 = vpop.f32.mrf.mxu0 }
 0x3a0   : > { %3297 = vst.msk [vmem:[%s5510_s30 + $0x48] sm:$0xff] %vm343_vm0, %v3265_v20  ;;  %v3270_v29 = vmax.f32 %v3238_v0, 0.0  ;;  %v3236_v43 = vadd.f32 %v3204_v61, %v3114_v1  ;;  %v3125_v23 = vadd.f32 %v3942_v30, %v5499_v3  ;;  %v3219_v0 = vld [vmem:[%s4083_s8 + $0xd8] sm:$0xff] }
 0x3a1   : > { %v3116_v59 = vpop.f32.mrf.mxu0 }
 0x3a2   : > { %3302 = vst.msk [vmem:[%s5510_s30 + $0x70] sm:$0xff] %vm343_vm0, %v3270_v29  ;;  %v3268_v58 = vmax.f32 %v3236_v43, 0.0  ;;  %v3239_v44 = vadd.f32 %v3207_v50, %v3125_v23  ;;  %v3117_v15 = vadd.f32 %v5499_v3, %v3116_v59  ;;  %v3217_v43 = vld [vmem:[%s4083_s8 + $0xc8] sm:$0xff] }
 0x3a3   : > { %v3945_v21 = vpop.f32.mrf.mxu0 }
 0x3a4   : > { %3300 = vst.msk [vmem:[%s5510_s30 + $0x60] sm:$0xff] %vm343_vm0, %v3268_v58  ;;  %v3271_v60 = vmax.f32 %v3239_v44, 0.0  ;;  %v3237_v26 = vadd.f32 %v3205_v6, %v3117_v15  ;;  %v3138_v51 = vadd.f32 %v3945_v21, %v5499_v3  ;;  %v3222_v44 = vld [vmem:[%s4083_s8 + $0xf0] sm:$0xff] }
 0x3a5   : > { %v3129_v12 = vpop.f32.mrf.mxu0 }
 0x3a6   : > { %3303 = vst.msk [vmem:[%s5510_s30 + $0x78] sm:$0xff] %vm343_vm0, %v3271_v60  ;;  %v3269_v35 = vmax.f32 %v3237_v26, 0.0  ;;  %v3242_v22 = vadd.f32 %v3210_v56, %v3138_v51  ;;  %v3130_v25 = vadd.f32 %v5499_v3, %v3129_v12  ;;  %v3220_v26 = vld [vmem:[%s4083_s8 + $0xe0] sm:$0xff] }
 0x3a7   : > { %v3946_v7 = vpop.f32.mrf.mxu0 }
 0x3a8   : > { %3301 = vst.msk [vmem:[%s5510_s30 + $0x68] sm:$0xff] %vm343_vm0, %v3269_v35  ;;  %v3274_v63 = vmax.f32 %v3242_v22, 0.0  ;;  %v3240_v46 = vadd.f32 %v3208_v45, %v3130_v25  ;;  %v3141_v33 = vadd.f32 %v3946_v7, %v5499_v3  ;;  %v3223_v22 = vld [vmem:[%s4083_s8 + $0xf8] sm:$0xff] }
 0x3a9   : > { %v3132_v11 = vpop.f32.mrf.mxu0 }
 0x3aa   : > { %3306 = vst.msk [vmem:[%s5510_s30 + $0x90] sm:$0xff] %vm343_vm0, %v3274_v63  ;;  %v3272_v16 = vmax.f32 %v3240_v46, 0.0  ;;  %v3243_v39 = vadd.f32 %v3211_v42, %v3141_v33  ;;  %v3133_v19 = vadd.f32 %v5499_v3, %v3132_v11  ;;  %v3221_v46 = vld [vmem:[%s4083_s8 + $0xe8] sm:$0xff] }
 0x3ab   : > { %v3949_v57 = vpop.f32.mrf.mxu0 }
 0x3ac   : > { %3304 = vst.msk [vmem:[%s5510_s30 + $0x80] sm:$0xff] %vm343_vm0, %v3272_v16  ;;  %v3275_v24 = vmax.f32 %v3243_v39, 0.0  ;;  %v3241_v5 = vadd.f32 %v3209_v47, %v3133_v19  ;;  %v3154_v41 = vadd.f32 %v3949_v57, %v5499_v3 }
 0x3ad   : > { %v3145_v28 = vpop.f32.mrf.mxu0 }
 0x3ae   : > { %3307 = vst.msk [vmem:[%s5510_s30 + $0x98] sm:$0xff] %vm343_vm0, %v3275_v24  ;;  %v3273_v32 = vmax.f32 %v3241_v5, 0.0  ;;  %v3246_v14 = vadd.f32 %v3214_v9, %v3154_v41  ;;  %v3146_v36 = vadd.f32 %v5499_v3, %v3145_v28 }
 0x3af   : > { %v3950_v4 = vpop.f32.mrf.mxu0 }
 0x3b0   : > { %3305 = vst.msk [vmem:[%s5510_s30 + $0x88] sm:$0xff] %vm343_vm0, %v3273_v32  ;;  %v3278_v49 = vmax.f32 %v3246_v14, 0.0  ;;  %v3244_v62 = vadd.f32 %v3212_v27, %v3146_v36  ;;  %v3157_v13 = vadd.f32 %v3950_v4, %v5499_v3 }
 0x3b1   : > { %v3148_v54 = vpop.f32.mrf.mxu0 }
 0x3b2   : > { %3310 = vst.msk [vmem:[%s5510_s30 + $0xb0] sm:$0xff] %vm343_vm0, %v3278_v49  ;;  %v3276_v18 = vmax.f32 %v3244_v62, 0.0  ;;  %v3247_v40 = vadd.f32 %v3215_v55, %v3157_v13  ;;  %v3149_v52 = vadd.f32 %v5499_v3, %v3148_v54 }
 0x3b3   : > { %v3953_v38 = vpop.f32.mrf.mxu0 }
 0x3b4   : > { %3308 = vst.msk [vmem:[%s5510_s30 + $0xa0] sm:$0xff] %vm343_vm0, %v3276_v18  ;;  %v3279_v8 = vmax.f32 %v3247_v40, 0.0  ;;  %v3245_v37 = vadd.f32 %v3213_v34, %v3149_v52  ;;  %v3170_v53 = vadd.f32 %v3953_v38, %v5499_v3 }
 0x3b5   : > { %v3161_v10 = vpop.f32.mrf.mxu0 }
 0x3b6   : > { %3311 = vst.msk [vmem:[%s5510_s30 + $0xb8] sm:$0xff] %vm343_vm0, %v3279_v8  ;;  %v3277_v31 = vmax.f32 %v3245_v37, 0.0  ;;  %v3250_v17 = vadd.f32 %v3218_v48, %v3170_v53  ;;  %v3162_v61 = vadd.f32 %v5499_v3, %v3161_v10 }
 0x3b7   : > { %v3954_v20 = vpop.f32.mrf.mxu0 }
 0x3b8   : > { %3309 = vst.msk [vmem:[%s5510_s30 + $0xa8] sm:$0xff] %vm343_vm0, %v3277_v31  ;;  %v3282_v1 = vmax.f32 %v3250_v17, 0.0  ;;  %v3248_v30 = vadd.f32 %v3216_v2, %v3162_v61  ;;  %v3173_v50 = vadd.f32 %v3954_v20, %v5499_v3 }
 0x3b9   : > { %v3164_v29 = vpop.f32.mrf.mxu0 }
 0x3ba   : > { %3314 = vst.msk [vmem:[%s5510_s30 + $0xd0] sm:$0xff] %vm343_vm0, %v3282_v1  ;;  %v3280_v23 = vmax.f32 %v3248_v30, 0.0  ;;  %v3251_v59 = vadd.f32 %v3219_v0, %v3173_v50  ;;  %v3165_v6 = vadd.f32 %v5499_v3, %v3164_v29 }
 0x3bb   : > { %v3957_v58 = vpop.f32.mrf.mxu0 }
 0x3bc   : > { %3312 = vst.msk [vmem:[%s5510_s30 + $0xc0] sm:$0xff] %vm343_vm0, %v3280_v23  ;;  %v3283_v15 = vmax.f32 %v3251_v59, 0.0  ;;  %v3249_v21 = vadd.f32 %v3217_v43, %v3165_v6  ;;  %v3186_v56 = vadd.f32 %v3957_v58, %v5499_v3 }
 0x3bd   : > { %v3177_v60 = vpop.f32.mrf.mxu0 }
 0x3be   : > { %3315 = vst.msk [vmem:[%s5510_s30 + $0xd8] sm:$0xff] %vm343_vm0, %v3283_v15  ;;  %v3281_v51 = vmax.f32 %v3249_v21, 0.0  ;;  %v3254_v12 = vadd.f32 %v3222_v44, %v3186_v56  ;;  %v3178_v45 = vadd.f32 %v5499_v3, %v3177_v60 }
 0x3bf   : > { %v3958_v35 = vpop.f32.mrf.mxu0 }
 0x3c0   : > { %3313 = vst.msk [vmem:[%s5510_s30 + $0xc8] sm:$0xff] %vm343_vm0, %v3281_v51  ;;  %v3286_v25 = vmax.f32 %v3254_v12, 0.0  ;;  %v3252_v7 = vadd.f32 %v3220_v26, %v3178_v45  ;;  %v3189_v42 = vadd.f32 %v3958_v35, %v5499_v3 }
 0x3c1   : > { %v3180_v63 = vpop.f32.mrf.mxu0 }
 0x3c2   : > { %3318 = vst.msk [vmem:[%s5510_s30 + $0xf0] sm:$0xff] %vm343_vm0, %v3286_v25  ;;  %v3284_v33 = vmax.f32 %v3252_v7, 0.0  ;;  %v3255_v11 = vadd.f32 %v3223_v22, %v3189_v42  ;;  %v3181_v47 = vadd.f32 %v5499_v3, %v3180_v63 }
 0x3c4   : > { %3316 = vst.msk [vmem:[%s5510_s30 + $0xe0] sm:$0xff] %vm343_vm0, %v3284_v33  ;;  %v3287_v16 = vmax.f32 %v3255_v11, 0.0  ;;  %v3253_v39 = vadd.f32 %v3221_v46, %v3181_v47 }
 0x3c6   : > { %3319 = vst.msk [vmem:[%s5510_s30 + $0xf8] sm:$0xff] %vm343_vm0, %v3287_v16  ;;  %v3285_v19 = vmax.f32 %v3253_v39, 0.0 }
 0x3c8   : > { %3317 = vst.msk [vmem:[%s5510_s30 + $0xe8] sm:$0xff] %vm343_vm0, %v3285_v19 }
 0x3c9 PF: > { %s17_s24 = sadd.s32 1, %s4019_s24  }
 0x3ca   : > { %p14_p4 = scmp.ge.s32.totalorder %s17_s24, 4  }
 0x3cc   :  { %16 = sbr.rel (!%p14_p4) target bundleno = 1 (0x1), region = 80 }

</bundles_post_ra>
